<compile_context>
chip_gen: v7x
topology: tpu7x:2x2x1
jax: 0.10.0
libtpu: 0.0.40
codegen_flags: <defaults>
</compile_context>

<pallas_src>
import math
import numpy as np

import jax
import jax.numpy as jnp
from jax.experimental import pallas as pl
from jax.experimental.pallas import tpu as pltpu


# ----------------------------- Pallas kernel ------------------------------- #

def make_g_kernel(cfg, n):
    """cfg: per-conv static config dicts (H, K, N, act, up, last)."""
    n_conv = len(cfg)

    def kernel(*refs):
        x_ref, fcw_ref, fcb_ref = refs[:3]
        conv_refs = refs[3:3 + 2 * n_conv]
        o_ref = refs[3 + 2 * n_conv]
        pad_a = refs[3 + 2 * n_conv + 1]
        pad_b = refs[3 + 2 * n_conv + 2]
        f32 = jnp.float32
        row_w = 8 * n                       # lanes per 8x8 row = W*C

        # ---- fc: (1,h) @ (h, 64*n), written lane-flat into the padded scratch
        pad_a[...] = jnp.zeros_like(pad_a)
        z = jnp.dot(x_ref[0], fcw_ref[...], preferred_element_type=f32)  # (1, 64n)
        for y in range(8):
            row = z[:, y * row_w:(y + 1) * row_w] + fcb_ref[y:y + 1, :]
            pad_a[:, 1 + y:2 + y, :row_w] = row.reshape(1, 1, row_w)

        # ---- conv stack, activations ping-pong between the two VMEM scratches
        src, dst = pad_a, pad_b
        for li, c in enumerate(cfg):
            w_ref = conv_refs[2 * li]       # (3, K, N) banded weights
            b_ref = conv_refs[2 * li + 1]   # (1, N)
            Hin, K, N = c['H'], c['K'], c['N']

            acc = jnp.zeros((Hin, N), f32)
            for dy in range(3):             # 3 matmuls per conv (one per row tap)
                m = src[:, dy:dy + Hin, :K].reshape(Hin, K)
                acc = acc + jnp.dot(m, w_ref[dy], preferred_element_type=f32)
            acc = acc + b_ref[...]

            if c['act'] == 'elu':
                # ELU(alpha=1): x if x > 0 else exp(x)-1
                acc = jnp.where(acc > 0, acc,
                                jnp.exp(jnp.minimum(acc, 0.0)) - 1.0)
            else:  # 'tanh'
                acc = jnp.tanh(acc)

            if c['last']:
                o_ref[...] = acc.reshape(1, Hin, N).astype(o_ref.dtype)
            else:
                dst[...] = jnp.zeros_like(dst)   # zero halo rows / stale lanes
                if c['up']:
                    # nearest 2x upsample: lanes were already duplicated by the
                    # banded weights; duplicate rows with a tiny 0/1 matmul.
                    ri = jax.lax.broadcasted_iota(jnp.int32, (2 * Hin, Hin), 0)
                    cj = jax.lax.broadcasted_iota(jnp.int32, (2 * Hin, Hin), 1)
                    dup = jnp.where((ri >= 2 * cj) & (ri < 2 * cj + 2),
                                    1.0, 0.0).astype(f32)
                    up = jnp.dot(dup, acc, preferred_element_type=f32)
                    dst[:, 1:2 * Hin + 1, :N] = up.reshape(1, 2 * Hin, N)
                else:
                    dst[:, 1:Hin + 1, :N] = acc.reshape(1, Hin, N)
                src, dst = dst, src

    return kernel


# ------------------------- host-side weight packing ------------------------ #

def _build_banded(w_pt, b_pt, w_in, w_out_blocks, upsample):
    """PyTorch conv weight (Cout,Cin,3,3) -> banded (3, w_in*Cin, w_out*Cout).

    Folds the W-direction zero padding into the band structure; if `upsample`,
    also folds the nearest-neighbour lane duplication (output block X reads the
    weights of output column X//2).
    """
    c_out, c_in = w_pt.shape[0], w_pt.shape[1]
    big = np.zeros((3, w_in * c_in, w_out_blocks * c_out), np.float32)
    for dy in range(3):
        for X in range(w_out_blocks):
            x = X // 2 if upsample else X
            for dx in range(3):
                j = x + dx - 1
                if 0 <= j < w_in:
                    big[dy, j * c_in:(j + 1) * c_in,
                        X * c_out:(X + 1) * c_out] = w_pt[:, :, dy, dx].T
    bigb = np.tile(b_pt.astype(np.float32), w_out_blocks)[None, :]
    return big, bigb


def build_kernel_params(pt, h, n, channel, width):
    blocks = pt['blocks']

    # fc weight permuted so column q = y*(8n) + x*n + c == PyTorch out c*64+y*8+x
    fcw_pt = np.asarray(pt['fc_w'])           # (64n, h)
    fcb_pt = np.asarray(pt['fc_b'])           # (64n,)
    perm = np.zeros((8, 8, n), np.int64)
    for y in range(8):
        for x in range(8):
            for c in range(n):
                perm[y, x, c] = c * 64 + y * 8 + x
    fcw = fcw_pt.T[:, perm.reshape(-1)]        # (h, 64n)
    fcb = fcb_pt[perm].reshape(8, 8 * n)       # (8, 8n)

    cfg, convs = [], []
    H, ci = 8, 0
    for i in range(blocks):
        for j in range(2):
            w_pt, b_pt = pt['convs'][ci]; ci += 1
            up = (j == 1 and i < blocks - 1)
            w_out_blocks = 2 * H if up else H
            big, bigb = _build_banded(np.asarray(w_pt), np.asarray(b_pt),
                                      H, w_out_blocks, up)
            cfg.append(dict(H=H, K=H * n, N=w_out_blocks * n,
                            act='elu', up=up, last=False))
            convs.append((jnp.asarray(big), jnp.asarray(bigb)))
            if up:
                H *= 2
    w_pt, b_pt = pt['convs'][ci]
    big, bigb = _build_banded(np.asarray(w_pt), np.asarray(b_pt), H, H, False)
    cfg.append(dict(H=H, K=H * n, N=H * channel, act='tanh', up=False, last=True))
    convs.append((jnp.asarray(big), jnp.asarray(bigb)))

    max_lane = max(max(c['K'], c['N']) for c in cfg)
    return dict(fcw=jnp.asarray(fcw), fcb=jnp.asarray(fcb), convs=convs,
                cfg=cfg, n=n, channel=channel, width=width, max_lane=max_lane)


# ------------------------------- forward pass ------------------------------ #

def g_forward(x, kp):
    """x: (B, h) latent -> (B, channel, width, width) NCHW, like PyTorch."""
    B, h = x.shape
    width, channel, n = kp['width'], kp['channel'], kp['n']
    cfg, max_lane = kp['cfg'], kp['max_lane']
    out_lane = width * channel

    x3 = x.reshape(B, 1, h).astype(jnp.float32)
    inputs = [x3, kp['fcw'], kp['fcb']]
    in_specs = [
        pl.BlockSpec((1, 1, h), lambda b: (b, 0, 0)),
        pl.BlockSpec(kp['fcw'].shape, lambda b: (0, 0)),
        pl.BlockSpec(kp['fcb'].shape, lambda b: (0, 0)),
    ]
    for (w, bb) in kp['convs']:
        inputs += [w, bb]
        in_specs += [pl.BlockSpec(w.shape, lambda b: (0, 0, 0)),
                     pl.BlockSpec(bb.shape, lambda b: (0, 0))]

    grid_spec = pltpu.PrefetchScalarGridSpec(
        num_scalar_prefetch=0,
        grid=(B,),
        in_specs=in_specs,
        out_specs=pl.BlockSpec((1, width, out_lane), lambda b: (b, 0, 0)),
        scratch_shapes=[
            pltpu.VMEM((1, width + 2, max_lane), jnp.float32),
            pltpu.VMEM((1, width + 2, max_lane), jnp.float32),
        ],
    )
    out = pl.pallas_call(
        make_g_kernel(cfg, n),
        out_shape=jax.ShapeDtypeStruct((B, width, out_lane), jnp.float32),
        grid_spec=grid_spec,
        compiler_params=pltpu.CompilerParams(
            dimension_semantics=("parallel",)),
    )(*inputs)

    # layout fix-up only (tiny): (B, W, W*C) -> NHWC -> NCHW
    out = out.reshape(B, width, width, channel)
    return jnp.transpose(out, (0, 3, 1, 2))


# ------------------------- params + XLA reference -------------------------- #

def init_params(key, h, n, channel, width):
    """Deterministic init, PyTorch parameter shapes."""
    blocks = int(math.log2(width)) - 2

    def uniform(k, shape, fan_in):
        bound = 1.0 / math.sqrt(fan_in)
        return jax.random.uniform(k, shape, jnp.float32, -bound, bound)

    n_conv = 2 * blocks + 1
    keys = jax.random.split(key, 2 + 2 * n_conv)
    ki = iter(keys)
    fc_w = uniform(next(ki), (8 * 8 * n, h), h)        # (out, in)
    fc_b = uniform(next(ki), (8 * 8 * n,), h)
    convs = []
    for _ in range(2 * blocks):
        w = uniform(next(ki), (n, n, 3, 3), n * 9)     # (Cout, Cin, 3, 3)
        b = uniform(next(ki), (n,), n * 9)
        convs.append((w, b))
    w = uniform(next(ki), (channel, n, 3, 3), n * 9)
    b = uniform(next(ki), (channel,), n * 9)
    convs.append((w, b))
    return dict(fc_w=fc_w, fc_b=fc_b, convs=convs, blocks=blocks,
                n=n, channel=channel, width=width)


def g_reference(x, pt):
    """Pure-XLA reference (for numerical verification only)."""
    n, blocks = pt['n'], pt['blocks']

    def conv(z, w, b):
        y = jax.lax.conv_general_dilated(
            z, w, (1, 1), ((1, 1), (1, 1)),
            dimension_numbers=('NCHW', 'OIHW', 'NCHW'))
        return y + b[None, :, None, None]

    elu = lambda v: jnp.where(v > 0, v, jnp.exp(jnp.minimum(v, 0.0)) - 1.0)

    out = (x @ pt['fc_w'].T + pt['fc_b']).reshape(-1, n, 8, 8)
    ci = 0
    for i in range(blocks):
        out = elu(conv(out, *pt['convs'][ci])); ci += 1
        out = elu(conv(out, *pt['convs'][ci])); ci += 1
        if i < blocks - 1:
            out = jnp.repeat(jnp.repeat(out, 2, axis=2), 2, axis=3)
    out = conv(out, *pt['convs'][ci])
    return jnp.tanh(out)


# ---------------------------------- main ----------------------------------- #

if __name__ == "__main__":
    # Small config: h=32, n=8, output_dim=(3, 16, 16) => blocks = log2(16)-2 = 2
    B, H_LATENT, N_CH, CHANNEL, WIDTH = 2, 32, 8, 3, 16

    key = jax.random.PRNGKey(0)
    k_param, k_x = jax.random.split(key)
    pt = init_params(k_param, H_LATENT, N_CH, CHANNEL, WIDTH)
    kp = build_kernel_params(pt, H_LATENT, N_CH, CHANNEL, WIDTH)

    x = jax.random.normal(k_x, (B, H_LATENT), jnp.float32)

    out = jax.block_until_ready(g_forward(x, kp))
    ref = jax.block_until_ready(g_reference(x, pt))

    assert out.shape == (B, CHANNEL, WIDTH, WIDTH), out.shape
    assert bool(jnp.all(jnp.isfinite(out)))
    assert bool(jnp.all(jnp.abs(out) <= 1.0))          # tanh range
    err = float(jnp.max(jnp.abs(out - ref)))
    assert err < 2e-4, f"mismatch vs XLA reference: {err}"
    print("KERNEL_OK")
</pallas_src>

<mosaic_0001>
module attributes {stable_mosaic.version = 11 : i64} {
  func.func @kernel(%arg0: i32, %arg1: memref<1x1x32xf32, #tpu.memory_space<vmem>>, %arg2: memref<32x512xf32, #tpu.memory_space<vmem>>, %arg3: memref<8x64xf32, #tpu.memory_space<vmem>>, %arg4: memref<3x64x64xf32, #tpu.memory_space<vmem>>, %arg5: memref<1x64xf32, #tpu.memory_space<vmem>>, %arg6: memref<3x64x128xf32, #tpu.memory_space<vmem>>, %arg7: memref<1x128xf32, #tpu.memory_space<vmem>>, %arg8: memref<3x128x128xf32, #tpu.memory_space<vmem>>, %arg9: memref<1x128xf32, #tpu.memory_space<vmem>>, %arg10: memref<3x128x128xf32, #tpu.memory_space<vmem>>, %arg11: memref<1x128xf32, #tpu.memory_space<vmem>>, %arg12: memref<3x128x48xf32, #tpu.memory_space<vmem>>, %arg13: memref<1x48xf32, #tpu.memory_space<vmem>>, %arg14: memref<1x16x48xf32, #tpu.memory_space<vmem>>, %arg15: memref<1x18x128xf32, #tpu.memory_space<vmem>>, %arg16: memref<1x18x128xf32, #tpu.memory_space<vmem>>) attributes {dimension_semantics = [#tpu.dimension_semantics<parallel>], iteration_bounds = array<i64: 2>, scalar_prefetch = 0 : i64, scratch_operands = 2 : i64, tpu.core_type = #tpu.core_type<tc>, window_params = [{transform_indices = @transform_0, window_bounds = array<i64: 1, 1, 32>}, {pipeline_mode = #tpu.pipeline_mode<synchronous>, transform_indices = @transform_1, window_bounds = array<i64: 32, 512>}, {pipeline_mode = #tpu.pipeline_mode<synchronous>, transform_indices = @transform_2, window_bounds = array<i64: 8, 64>}, {pipeline_mode = #tpu.pipeline_mode<synchronous>, transform_indices = @transform_3, window_bounds = array<i64: 3, 64, 64>}, {pipeline_mode = #tpu.pipeline_mode<synchronous>, transform_indices = @transform_4, window_bounds = array<i64: 1, 64>}, {pipeline_mode = #tpu.pipeline_mode<synchronous>, transform_indices = @transform_5, window_bounds = array<i64: 3, 64, 128>}, {pipeline_mode = #tpu.pipeline_mode<synchronous>, transform_indices = @transform_6, window_bounds = array<i64: 1, 128>}, {pipeline_mode = #tpu.pipeline_mode<synchronous>, transform_indices = @transform_7, window_bounds = array<i64: 3, 128, 128>}, {pipeline_mode = #tpu.pipeline_mode<synchronous>, transform_indices = @transform_8, window_bounds = array<i64: 1, 128>}, {pipeline_mode = #tpu.pipeline_mode<synchronous>, transform_indices = @transform_9, window_bounds = array<i64: 3, 128, 128>}, {pipeline_mode = #tpu.pipeline_mode<synchronous>, transform_indices = @transform_10, window_bounds = array<i64: 1, 128>}, {pipeline_mode = #tpu.pipeline_mode<synchronous>, transform_indices = @transform_11, window_bounds = array<i64: 3, 128, 48>}, {pipeline_mode = #tpu.pipeline_mode<synchronous>, transform_indices = @transform_12, window_bounds = array<i64: 1, 48>}, {transform_indices = @transform_13, window_bounds = array<i64: 1, 16, 48>}]} {
    %cst = arith.constant 0.000000e+00 : f32
    %0 = vector.broadcast %cst : f32 to vector<1x18x128xf32>
    %c0 = arith.constant 0 : index
    %c0_0 = arith.constant 0 : index
    %c0_1 = arith.constant 0 : index
    %1 = vector.load %arg15[%c0, %c0_0, %c0_1] : memref<1x18x128xf32, #tpu.memory_space<vmem>>, vector<1x18x128xf32>
    tpu.vector_store %arg15[%c0, %c0_0, %c0_1], %0 {strides = array<i32>} : memref<1x18x128xf32, #tpu.memory_space<vmem>>, vector<1x18x128xf32>,
    %c0_2 = arith.constant 0 : index
    %c0_3 = arith.constant 0 : index
    %c0_4 = arith.constant 0 : index
    %2 = vector.load %arg1[%c0_2, %c0_3, %c0_4] : memref<1x1x32xf32, #tpu.memory_space<vmem>>, vector<1x1x32xf32>
    %3 = vector.shape_cast %2 : vector<1x1x32xf32> to vector<1x32xf32>
    %c0_5 = arith.constant 0 : index
    %c0_6 = arith.constant 0 : index
    %4 = vector.load %arg2[%c0_5, %c0_6] : memref<32x512xf32, #tpu.memory_space<vmem>>, vector<32x512xf32>
    %cst_7 = arith.constant dense<0.000000e+00> : vector<1x512xf32>
    %5 = tpu.matmul %3, %4, %cst_7 {dimension_numbers = #tpu.dot_dimension_numbers<[1], [0], [0], [1], [0, 0, 1, 1], [], []>} : vector<1x32xf32>, vector<32x512xf32>, vector<1x512xf32> -> vector<1x512xf32>
    %6 = vector.extract_strided_slice %5 {offsets = [0, 0], sizes = [1, 64], strides = [1, 1]} : vector<1x512xf32> to vector<1x64xf32>
    %c0_8 = arith.constant 0 : index
    %c0_9 = arith.constant 0 : index
    %7 = vector.load %arg3[%c0_8, %c0_9] : memref<8x64xf32, #tpu.memory_space<vmem>>, vector<1x64xf32>
    %8 = arith.addf %6, %7 : vector<1x64xf32>
    %9 = vector.shape_cast %8 : vector<1x64xf32> to vector<1x1x64xf32>
    %c0_10 = arith.constant 0 : index
    %c1 = arith.constant 1 : index
    %c0_11 = arith.constant 0 : index
    %10 = vector.load %arg15[%c0_10, %c1, %c0_11] : memref<1x18x128xf32, #tpu.memory_space<vmem>>, vector<1x1x64xf32>
    tpu.vector_store %arg15[%c0_10, %c1, %c0_11], %9 {strides = array<i32>} : memref<1x18x128xf32, #tpu.memory_space<vmem>>, vector<1x1x64xf32>,
    %11 = vector.extract_strided_slice %5 {offsets = [0, 64], sizes = [1, 64], strides = [1, 1]} : vector<1x512xf32> to vector<1x64xf32>
    %c1_12 = arith.constant 1 : index
    %c0_13 = arith.constant 0 : index
    %12 = vector.load %arg3[%c1_12, %c0_13] : memref<8x64xf32, #tpu.memory_space<vmem>>, vector<1x64xf32>
    %13 = arith.addf %11, %12 : vector<1x64xf32>
    %14 = vector.shape_cast %13 : vector<1x64xf32> to vector<1x1x64xf32>
    %c0_14 = arith.constant 0 : index
    %c2 = arith.constant 2 : index
    %c0_15 = arith.constant 0 : index
    %15 = vector.load %arg15[%c0_14, %c2, %c0_15] : memref<1x18x128xf32, #tpu.memory_space<vmem>>, vector<1x1x64xf32>
    tpu.vector_store %arg15[%c0_14, %c2, %c0_15], %14 {strides = array<i32>} : memref<1x18x128xf32, #tpu.memory_space<vmem>>, vector<1x1x64xf32>,
    %16 = vector.extract_strided_slice %5 {offsets = [0, 128], sizes = [1, 64], strides = [1, 1]} : vector<1x512xf32> to vector<1x64xf32>
    %c2_16 = arith.constant 2 : index
    %c0_17 = arith.constant 0 : index
    %17 = vector.load %arg3[%c2_16, %c0_17] : memref<8x64xf32, #tpu.memory_space<vmem>>, vector<1x64xf32>
    %18 = arith.addf %16, %17 : vector<1x64xf32>
    %19 = vector.shape_cast %18 : vector<1x64xf32> to vector<1x1x64xf32>
    %c0_18 = arith.constant 0 : index
    %c3 = arith.constant 3 : index
    %c0_19 = arith.constant 0 : index
    %20 = vector.load %arg15[%c0_18, %c3, %c0_19] : memref<1x18x128xf32, #tpu.memory_space<vmem>>, vector<1x1x64xf32>
    tpu.vector_store %arg15[%c0_18, %c3, %c0_19], %19 {strides = array<i32>} : memref<1x18x128xf32, #tpu.memory_space<vmem>>, vector<1x1x64xf32>,
    %21 = vector.extract_strided_slice %5 {offsets = [0, 192], sizes = [1, 64], strides = [1, 1]} : vector<1x512xf32> to vector<1x64xf32>
    %c3_20 = arith.constant 3 : index
    %c0_21 = arith.constant 0 : index
    %22 = vector.load %arg3[%c3_20, %c0_21] : memref<8x64xf32, #tpu.memory_space<vmem>>, vector<1x64xf32>
    %23 = arith.addf %21, %22 : vector<1x64xf32>
    %24 = vector.shape_cast %23 : vector<1x64xf32> to vector<1x1x64xf32>
    %c0_22 = arith.constant 0 : index
    %c4 = arith.constant 4 : index
    %c0_23 = arith.constant 0 : index
    %25 = vector.load %arg15[%c0_22, %c4, %c0_23] : memref<1x18x128xf32, #tpu.memory_space<vmem>>, vector<1x1x64xf32>
    tpu.vector_store %arg15[%c0_22, %c4, %c0_23], %24 {strides = array<i32>} : memref<1x18x128xf32, #tpu.memory_space<vmem>>, vector<1x1x64xf32>,
    %26 = vector.extract_strided_slice %5 {offsets = [0, 256], sizes = [1, 64], strides = [1, 1]} : vector<1x512xf32> to vector<1x64xf32>
    %c4_24 = arith.constant 4 : index
    %c0_25 = arith.constant 0 : index
    %27 = vector.load %arg3[%c4_24, %c0_25] : memref<8x64xf32, #tpu.memory_space<vmem>>, vector<1x64xf32>
    %28 = arith.addf %26, %27 : vector<1x64xf32>
    %29 = vector.shape_cast %28 : vector<1x64xf32> to vector<1x1x64xf32>
    %c0_26 = arith.constant 0 : index
    %c5 = arith.constant 5 : index
    %c0_27 = arith.constant 0 : index
    %30 = vector.load %arg15[%c0_26, %c5, %c0_27] : memref<1x18x128xf32, #tpu.memory_space<vmem>>, vector<1x1x64xf32>
    tpu.vector_store %arg15[%c0_26, %c5, %c0_27], %29 {strides = array<i32>} : memref<1x18x128xf32, #tpu.memory_space<vmem>>, vector<1x1x64xf32>,
    %31 = vector.extract_strided_slice %5 {offsets = [0, 320], sizes = [1, 64], strides = [1, 1]} : vector<1x512xf32> to vector<1x64xf32>
    %c5_28 = arith.constant 5 : index
    %c0_29 = arith.constant 0 : index
    %32 = vector.load %arg3[%c5_28, %c0_29] : memref<8x64xf32, #tpu.memory_space<vmem>>, vector<1x64xf32>
    %33 = arith.addf %31, %32 : vector<1x64xf32>
    %34 = vector.shape_cast %33 : vector<1x64xf32> to vector<1x1x64xf32>
    %c0_30 = arith.constant 0 : index
    %c6 = arith.constant 6 : index
    %c0_31 = arith.constant 0 : index
    %35 = vector.load %arg15[%c0_30, %c6, %c0_31] : memref<1x18x128xf32, #tpu.memory_space<vmem>>, vector<1x1x64xf32>
    tpu.vector_store %arg15[%c0_30, %c6, %c0_31], %34 {strides = array<i32>} : memref<1x18x128xf32, #tpu.memory_space<vmem>>, vector<1x1x64xf32>,
    %36 = vector.extract_strided_slice %5 {offsets = [0, 384], sizes = [1, 64], strides = [1, 1]} : vector<1x512xf32> to vector<1x64xf32>
    %c6_32 = arith.constant 6 : index
    %c0_33 = arith.constant 0 : index
    %37 = vector.load %arg3[%c6_32, %c0_33] : memref<8x64xf32, #tpu.memory_space<vmem>>, vector<1x64xf32>
    %38 = arith.addf %36, %37 : vector<1x64xf32>
    %39 = vector.shape_cast %38 : vector<1x64xf32> to vector<1x1x64xf32>
    %c0_34 = arith.constant 0 : index
    %c7 = arith.constant 7 : index
    %c0_35 = arith.constant 0 : index
    %40 = vector.load %arg15[%c0_34, %c7, %c0_35] : memref<1x18x128xf32, #tpu.memory_space<vmem>>, vector<1x1x64xf32>
    tpu.vector_store %arg15[%c0_34, %c7, %c0_35], %39 {strides = array<i32>} : memref<1x18x128xf32, #tpu.memory_space<vmem>>, vector<1x1x64xf32>,
    %41 = vector.extract_strided_slice %5 {offsets = [0, 448], sizes = [1, 64], strides = [1, 1]} : vector<1x512xf32> to vector<1x64xf32>
    %c7_36 = arith.constant 7 : index
    %c0_37 = arith.constant 0 : index
    %42 = vector.load %arg3[%c7_36, %c0_37] : memref<8x64xf32, #tpu.memory_space<vmem>>, vector<1x64xf32>
    %43 = arith.addf %41, %42 : vector<1x64xf32>
    %44 = vector.shape_cast %43 : vector<1x64xf32> to vector<1x1x64xf32>
    %c0_38 = arith.constant 0 : index
    %c8 = arith.constant 8 : index
    %c0_39 = arith.constant 0 : index
    %45 = vector.load %arg15[%c0_38, %c8, %c0_39] : memref<1x18x128xf32, #tpu.memory_space<vmem>>, vector<1x1x64xf32>
    tpu.vector_store %arg15[%c0_38, %c8, %c0_39], %44 {strides = array<i32>} : memref<1x18x128xf32, #tpu.memory_space<vmem>>, vector<1x1x64xf32>,
    %cst_40 = arith.constant 0.000000e+00 : f32
    %46 = vector.broadcast %cst_40 : f32 to vector<8x64xf32>
    %c0_41 = arith.constant 0 : index
    %c0_42 = arith.constant 0 : index
    %c0_43 = arith.constant 0 : index
    %47 = vector.load %arg15[%c0_41, %c0_42, %c0_43] : memref<1x18x128xf32, #tpu.memory_space<vmem>>, vector<1x8x64xf32>
    %48 = vector.shape_cast %47 : vector<1x8x64xf32> to vector<8x64xf32>
    %c0_44 = arith.constant 0 : index
    %c0_45 = arith.constant 0 : index
    %c0_46 = arith.constant 0 : index
    %49 = vector.load %arg4[%c0_44, %c0_45, %c0_46] : memref<3x64x64xf32, #tpu.memory_space<vmem>>, vector<1x64x64xf32>
    %50 = vector.shape_cast %49 : vector<1x64x64xf32> to vector<64x64xf32>
    %cst_47 = arith.constant dense<0.000000e+00> : vector<8x64xf32>
    %51 = tpu.matmul %48, %50, %cst_47 {dimension_numbers = #tpu.dot_dimension_numbers<[1], [0], [0], [1], [0, 0, 1, 1], [], []>} : vector<8x64xf32>, vector<64x64xf32>, vector<8x64xf32> -> vector<8x64xf32>
    %52 = arith.addf %46, %51 : vector<8x64xf32>
    %c0_48 = arith.constant 0 : index
    %c1_49 = arith.constant 1 : index
    %c0_50 = arith.constant 0 : index
    %53 = vector.load %arg15[%c0_48, %c1_49, %c0_50] : memref<1x18x128xf32, #tpu.memory_space<vmem>>, vector<1x8x64xf32>
    %54 = vector.shape_cast %53 : vector<1x8x64xf32> to vector<8x64xf32>
    %c1_51 = arith.constant 1 : index
    %c0_52 = arith.constant 0 : index
    %c0_53 = arith.constant 0 : index
    %55 = vector.load %arg4[%c1_51, %c0_52, %c0_53] : memref<3x64x64xf32, #tpu.memory_space<vmem>>, vector<1x64x64xf32>
    %56 = vector.shape_cast %55 : vector<1x64x64xf32> to vector<64x64xf32>
    %cst_54 = arith.constant dense<0.000000e+00> : vector<8x64xf32>
    %57 = tpu.matmul %54, %56, %cst_54 {dimension_numbers = #tpu.dot_dimension_numbers<[1], [0], [0], [1], [0, 0, 1, 1], [], []>} : vector<8x64xf32>, vector<64x64xf32>, vector<8x64xf32> -> vector<8x64xf32>
    %58 = arith.addf %52, %57 : vector<8x64xf32>
    %c0_55 = arith.constant 0 : index
    %c2_56 = arith.constant 2 : index
    %c0_57 = arith.constant 0 : index
    %59 = vector.load %arg15[%c0_55, %c2_56, %c0_57] : memref<1x18x128xf32, #tpu.memory_space<vmem>>, vector<1x8x64xf32>
    %60 = vector.shape_cast %59 : vector<1x8x64xf32> to vector<8x64xf32>
    %c2_58 = arith.constant 2 : index
    %c0_59 = arith.constant 0 : index
    %c0_60 = arith.constant 0 : index
    %61 = vector.load %arg4[%c2_58, %c0_59, %c0_60] : memref<3x64x64xf32, #tpu.memory_space<vmem>>, vector<1x64x64xf32>
    %62 = vector.shape_cast %61 : vector<1x64x64xf32> to vector<64x64xf32>
    %cst_61 = arith.constant dense<0.000000e+00> : vector<8x64xf32>
    %63 = tpu.matmul %60, %62, %cst_61 {dimension_numbers = #tpu.dot_dimension_numbers<[1], [0], [0], [1], [0, 0, 1, 1], [], []>} : vector<8x64xf32>, vector<64x64xf32>, vector<8x64xf32> -> vector<8x64xf32>
    %64 = arith.addf %58, %63 : vector<8x64xf32>
    %c0_62 = arith.constant 0 : index
    %c0_63 = arith.constant 0 : index
    %65 = vector.load %arg5[%c0_62, %c0_63] : memref<1x64xf32, #tpu.memory_space<vmem>>, vector<1x64xf32>
    %66 = vector.broadcast %65 : vector<1x64xf32> to vector<8x64xf32>
    %67 = arith.addf %64, %66 : vector<8x64xf32>
    %cst_64 = arith.constant 0.000000e+00 : f32
    %68 = vector.broadcast %cst_64 : f32 to vector<8x64xf32>
    %69 = arith.cmpf ogt, %67, %68 : vector<8x64xf32>
    %cst_65 = arith.constant 0.000000e+00 : f32
    %70 = vector.broadcast %cst_65 : f32 to vector<8x64xf32>
    %71 = arith.minimumf %67, %70 : vector<8x64xf32>
    %72 = math.exp %71 : vector<8x64xf32>
    %cst_66 = arith.constant 1.000000e+00 : f32
    %73 = vector.broadcast %cst_66 : f32 to vector<8x64xf32>
    %74 = arith.subf %72, %73 : vector<8x64xf32>
    %75 = arith.select %69, %67, %74 : vector<8x64xi1>, vector<8x64xf32>
    %cst_67 = arith.constant 0.000000e+00 : f32
    %76 = vector.broadcast %cst_67 : f32 to vector<1x18x128xf32>
    %c0_68 = arith.constant 0 : index
    %c0_69 = arith.constant 0 : index
    %c0_70 = arith.constant 0 : index
    %77 = vector.load %arg16[%c0_68, %c0_69, %c0_70] : memref<1x18x128xf32, #tpu.memory_space<vmem>>, vector<1x18x128xf32>
    tpu.vector_store %arg16[%c0_68, %c0_69, %c0_70], %76 {strides = array<i32>} : memref<1x18x128xf32, #tpu.memory_space<vmem>>, vector<1x18x128xf32>,
    %78 = vector.shape_cast %75 : vector<8x64xf32> to vector<1x8x64xf32>
    %c0_71 = arith.constant 0 : index
    %c1_72 = arith.constant 1 : index
    %c0_73 = arith.constant 0 : index
    %79 = vector.load %arg16[%c0_71, %c1_72, %c0_73] : memref<1x18x128xf32, #tpu.memory_space<vmem>>, vector<1x8x64xf32>
    tpu.vector_store %arg16[%c0_71, %c1_72, %c0_73], %78 {strides = array<i32>} : memref<1x18x128xf32, #tpu.memory_space<vmem>>, vector<1x8x64xf32>,
    %cst_74 = arith.constant 0.000000e+00 : f32
    %80 = vector.broadcast %cst_74 : f32 to vector<8x128xf32>
    %c0_75 = arith.constant 0 : index
    %c0_76 = arith.constant 0 : index
    %c0_77 = arith.constant 0 : index
    %81 = vector.load %arg16[%c0_75, %c0_76, %c0_77] : memref<1x18x128xf32, #tpu.memory_space<vmem>>, vector<1x8x64xf32>
    %82 = vector.shape_cast %81 : vector<1x8x64xf32> to vector<8x64xf32>
    %c0_78 = arith.constant 0 : index
    %c0_79 = arith.constant 0 : index
    %c0_80 = arith.constant 0 : index
    %83 = vector.load %arg6[%c0_78, %c0_79, %c0_80] : memref<3x64x128xf32, #tpu.memory_space<vmem>>, vector<1x64x128xf32>
    %84 = vector.shape_cast %83 : vector<1x64x128xf32> to vector<64x128xf32>
    %cst_81 = arith.constant dense<0.000000e+00> : vector<8x128xf32>
    %85 = tpu.matmul %82, %84, %cst_81 {dimension_numbers = #tpu.dot_dimension_numbers<[1], [0], [0], [1], [0, 0, 1, 1], [], []>} : vector<8x64xf32>, vector<64x128xf32>, vector<8x128xf32> -> vector<8x128xf32>
    %86 = arith.addf %80, %85 : vector<8x128xf32>
    %c0_82 = arith.constant 0 : index
    %c1_83 = arith.constant 1 : index
    %c0_84 = arith.constant 0 : index
    %87 = vector.load %arg16[%c0_82, %c1_83, %c0_84] : memref<1x18x128xf32, #tpu.memory_space<vmem>>, vector<1x8x64xf32>
    %88 = vector.shape_cast %87 : vector<1x8x64xf32> to vector<8x64xf32>
    %c1_85 = arith.constant 1 : index
    %c0_86 = arith.constant 0 : index
    %c0_87 = arith.constant 0 : index
    %89 = vector.load %arg6[%c1_85, %c0_86, %c0_87] : memref<3x64x128xf32, #tpu.memory_space<vmem>>, vector<1x64x128xf32>
    %90 = vector.shape_cast %89 : vector<1x64x128xf32> to vector<64x128xf32>
    %cst_88 = arith.constant dense<0.000000e+00> : vector<8x128xf32>
    %91 = tpu.matmul %88, %90, %cst_88 {dimension_numbers = #tpu.dot_dimension_numbers<[1], [0], [0], [1], [0, 0, 1, 1], [], []>} : vector<8x64xf32>, vector<64x128xf32>, vector<8x128xf32> -> vector<8x128xf32>
    %92 = arith.addf %86, %91 : vector<8x128xf32>
    %c0_89 = arith.constant 0 : index
    %c2_90 = arith.constant 2 : index
    %c0_91 = arith.constant 0 : index
    %93 = vector.load %arg16[%c0_89, %c2_90, %c0_91] : memref<1x18x128xf32, #tpu.memory_space<vmem>>, vector<1x8x64xf32>
    %94 = vector.shape_cast %93 : vector<1x8x64xf32> to vector<8x64xf32>
    %c2_92 = arith.constant 2 : index
    %c0_93 = arith.constant 0 : index
    %c0_94 = arith.constant 0 : index
    %95 = vector.load %arg6[%c2_92, %c0_93, %c0_94] : memref<3x64x128xf32, #tpu.memory_space<vmem>>, vector<1x64x128xf32>
    %96 = vector.shape_cast %95 : vector<1x64x128xf32> to vector<64x128xf32>
    %cst_95 = arith.constant dense<0.000000e+00> : vector<8x128xf32>
    %97 = tpu.matmul %94, %96, %cst_95 {dimension_numbers = #tpu.dot_dimension_numbers<[1], [0], [0], [1], [0, 0, 1, 1], [], []>} : vector<8x64xf32>, vector<64x128xf32>, vector<8x128xf32> -> vector<8x128xf32>
    %98 = arith.addf %92, %97 : vector<8x128xf32>
    %c0_96 = arith.constant 0 : index
    %c0_97 = arith.constant 0 : index
    %99 = vector.load %arg7[%c0_96, %c0_97] : memref<1x128xf32, #tpu.memory_space<vmem>>, vector<1x128xf32>
    %100 = vector.broadcast %99 : vector<1x128xf32> to vector<8x128xf32>
    %101 = arith.addf %98, %100 : vector<8x128xf32>
    %cst_98 = arith.constant 0.000000e+00 : f32
    %102 = vector.broadcast %cst_98 : f32 to vector<8x128xf32>
    %103 = arith.cmpf ogt, %101, %102 : vector<8x128xf32>
    %cst_99 = arith.constant 0.000000e+00 : f32
    %104 = vector.broadcast %cst_99 : f32 to vector<8x128xf32>
    %105 = arith.minimumf %101, %104 : vector<8x128xf32>
    %106 = math.exp %105 : vector<8x128xf32>
    %cst_100 = arith.constant 1.000000e+00 : f32
    %107 = vector.broadcast %cst_100 : f32 to vector<8x128xf32>
    %108 = arith.subf %106, %107 : vector<8x128xf32>
    %109 = arith.select %103, %101, %108 : vector<8x128xi1>, vector<8x128xf32>
    %cst_101 = arith.constant 0.000000e+00 : f32
    %110 = vector.broadcast %cst_101 : f32 to vector<1x18x128xf32>
    %c0_102 = arith.constant 0 : index
    %c0_103 = arith.constant 0 : index
    %c0_104 = arith.constant 0 : index
    %111 = vector.load %arg15[%c0_102, %c0_103, %c0_104] : memref<1x18x128xf32, #tpu.memory_space<vmem>>, vector<1x18x128xf32>
    tpu.vector_store %arg15[%c0_102, %c0_103, %c0_104], %110 {strides = array<i32>} : memref<1x18x128xf32, #tpu.memory_space<vmem>>, vector<1x18x128xf32>,
    %112 = tpu.iota {dimensions = array<i32: 0>} : vector<16x8xi32>
    %113 = tpu.iota {dimensions = array<i32: 1>} : vector<16x8xi32>
    %c2_i32 = arith.constant 2 : i32
    %114 = vector.broadcast %c2_i32 : i32 to vector<16x8xi32>
    %115 = arith.muli %114, %113 : vector<16x8xi32>
    %116 = arith.cmpi sge, %112, %115 : vector<16x8xi32>
    %c2_i32_105 = arith.constant 2 : i32
    %117 = vector.broadcast %c2_i32_105 : i32 to vector<16x8xi32>
    %118 = arith.muli %117, %113 : vector<16x8xi32>
    %c2_i32_106 = arith.constant 2 : i32
    %119 = vector.broadcast %c2_i32_106 : i32 to vector<16x8xi32>
    %120 = arith.addi %118, %119 : vector<16x8xi32>
    %121 = arith.cmpi slt, %112, %120 : vector<16x8xi32>
    %122 = arith.andi %116, %121 : vector<16x8xi1>
    %cst_107 = arith.constant 1.000000e+00 : f32
    %cst_108 = arith.constant 0.000000e+00 : f32
    %123 = vector.broadcast %cst_107 : f32 to vector<16x8xf32>
    %124 = vector.broadcast %cst_108 : f32 to vector<16x8xf32>
    %125 = arith.select %122, %123, %124 : vector<16x8xi1>, vector<16x8xf32>
    %cst_109 = arith.constant dense<0.000000e+00> : vector<16x128xf32>
    %126 = tpu.matmul %125, %109, %cst_109 {dimension_numbers = #tpu.dot_dimension_numbers<[1], [0], [0], [1], [0, 0, 1, 1], [], []>} : vector<16x8xf32>, vector<8x128xf32>, vector<16x128xf32> -> vector<16x128xf32>
    %127 = vector.shape_cast %126 : vector<16x128xf32> to vector<1x16x128xf32>
    %c0_110 = arith.constant 0 : index
    %c1_111 = arith.constant 1 : index
    %c0_112 = arith.constant 0 : index
    %128 = vector.load %arg15[%c0_110, %c1_111, %c0_112] : memref<1x18x128xf32, #tpu.memory_space<vmem>>, vector<1x16x128xf32>
    tpu.vector_store %arg15[%c0_110, %c1_111, %c0_112], %127 {strides = array<i32>} : memref<1x18x128xf32, #tpu.memory_space<vmem>>, vector<1x16x128xf32>,
    %cst_113 = arith.constant 0.000000e+00 : f32
    %129 = vector.broadcast %cst_113 : f32 to vector<16x128xf32>
    %c0_114 = arith.constant 0 : index
    %c0_115 = arith.constant 0 : index
    %c0_116 = arith.constant 0 : index
    %130 = vector.load %arg15[%c0_114, %c0_115, %c0_116] : memref<1x18x128xf32, #tpu.memory_space<vmem>>, vector<1x16x128xf32>
    %131 = vector.shape_cast %130 : vector<1x16x128xf32> to vector<16x128xf32>
    %c0_117 = arith.constant 0 : index
    %c0_118 = arith.constant 0 : index
    %c0_119 = arith.constant 0 : index
    %132 = vector.load %arg8[%c0_117, %c0_118, %c0_119] : memref<3x128x128xf32, #tpu.memory_space<vmem>>, vector<1x128x128xf32>
    %133 = vector.shape_cast %132 : vector<1x128x128xf32> to vector<128x128xf32>
    %cst_120 = arith.constant dense<0.000000e+00> : vector<16x128xf32>
    %134 = tpu.matmul %131, %133, %cst_120 {dimension_numbers = #tpu.dot_dimension_numbers<[1], [0], [0], [1], [0, 0, 1, 1], [], []>} : vector<16x128xf32>, vector<128x128xf32>, vector<16x128xf32> -> vector<16x128xf32>
    %135 = arith.addf %129, %134 : vector<16x128xf32>
    %c0_121 = arith.constant 0 : index
    %c1_122 = arith.constant 1 : index
    %c0_123 = arith.constant 0 : index
    %136 = vector.load %arg15[%c0_121, %c1_122, %c0_123] : memref<1x18x128xf32, #tpu.memory_space<vmem>>, vector<1x16x128xf32>
    %137 = vector.shape_cast %136 : vector<1x16x128xf32> to vector<16x128xf32>
    %c1_124 = arith.constant 1 : index
    %c0_125 = arith.constant 0 : index
    %c0_126 = arith.constant 0 : index
    %138 = vector.load %arg8[%c1_124, %c0_125, %c0_126] : memref<3x128x128xf32, #tpu.memory_space<vmem>>, vector<1x128x128xf32>
    %139 = vector.shape_cast %138 : vector<1x128x128xf32> to vector<128x128xf32>
    %cst_127 = arith.constant dense<0.000000e+00> : vector<16x128xf32>
    %140 = tpu.matmul %137, %139, %cst_127 {dimension_numbers = #tpu.dot_dimension_numbers<[1], [0], [0], [1], [0, 0, 1, 1], [], []>} : vector<16x128xf32>, vector<128x128xf32>, vector<16x128xf32> -> vector<16x128xf32>
    %141 = arith.addf %135, %140 : vector<16x128xf32>
    %c0_128 = arith.constant 0 : index
    %c2_129 = arith.constant 2 : index
    %c0_130 = arith.constant 0 : index
    %142 = vector.load %arg15[%c0_128, %c2_129, %c0_130] : memref<1x18x128xf32, #tpu.memory_space<vmem>>, vector<1x16x128xf32>
    %143 = vector.shape_cast %142 : vector<1x16x128xf32> to vector<16x128xf32>
    %c2_131 = arith.constant 2 : index
    %c0_132 = arith.constant 0 : index
    %c0_133 = arith.constant 0 : index
    %144 = vector.load %arg8[%c2_131, %c0_132, %c0_133] : memref<3x128x128xf32, #tpu.memory_space<vmem>>, vector<1x128x128xf32>
    %145 = vector.shape_cast %144 : vector<1x128x128xf32> to vector<128x128xf32>
    %cst_134 = arith.constant dense<0.000000e+00> : vector<16x128xf32>
    %146 = tpu.matmul %143, %145, %cst_134 {dimension_numbers = #tpu.dot_dimension_numbers<[1], [0], [0], [1], [0, 0, 1, 1], [], []>} : vector<16x128xf32>, vector<128x128xf32>, vector<16x128xf32> -> vector<16x128xf32>
    %147 = arith.addf %141, %146 : vector<16x128xf32>
    %c0_135 = arith.constant 0 : index
    %c0_136 = arith.constant 0 : index
    %148 = vector.load %arg9[%c0_135, %c0_136] : memref<1x128xf32, #tpu.memory_space<vmem>>, vector<1x128xf32>
    %149 = vector.broadcast %148 : vector<1x128xf32> to vector<16x128xf32>
    %150 = arith.addf %147, %149 : vector<16x128xf32>
    %cst_137 = arith.constant 0.000000e+00 : f32
    %151 = vector.broadcast %cst_137 : f32 to vector<16x128xf32>
    %152 = arith.cmpf ogt, %150, %151 : vector<16x128xf32>
    %cst_138 = arith.constant 0.000000e+00 : f32
    %153 = vector.broadcast %cst_138 : f32 to vector<16x128xf32>
    %154 = arith.minimumf %150, %153 : vector<16x128xf32>
    %155 = math.exp %154 : vector<16x128xf32>
    %cst_139 = arith.constant 1.000000e+00 : f32
    %156 = vector.broadcast %cst_139 : f32 to vector<16x128xf32>
    %157 = arith.subf %155, %156 : vector<16x128xf32>
    %158 = arith.select %152, %150, %157 : vector<16x128xi1>, vector<16x128xf32>
    %cst_140 = arith.constant 0.000000e+00 : f32
    %159 = vector.broadcast %cst_140 : f32 to vector<1x18x128xf32>
    %c0_141 = arith.constant 0 : index
    %c0_142 = arith.constant 0 : index
    %c0_143 = arith.constant 0 : index
    %160 = vector.load %arg16[%c0_141, %c0_142, %c0_143] : memref<1x18x128xf32, #tpu.memory_space<vmem>>, vector<1x18x128xf32>
    tpu.vector_store %arg16[%c0_141, %c0_142, %c0_143], %159 {strides = array<i32>} : memref<1x18x128xf32, #tpu.memory_space<vmem>>, vector<1x18x128xf32>,
    %161 = vector.shape_cast %158 : vector<16x128xf32> to vector<1x16x128xf32>
    %c0_144 = arith.constant 0 : index
    %c1_145 = arith.constant 1 : index
    %c0_146 = arith.constant 0 : index
    %162 = vector.load %arg16[%c0_144, %c1_145, %c0_146] : memref<1x18x128xf32, #tpu.memory_space<vmem>>, vector<1x16x128xf32>
    tpu.vector_store %arg16[%c0_144, %c1_145, %c0_146], %161 {strides = array<i32>} : memref<1x18x128xf32, #tpu.memory_space<vmem>>, vector<1x16x128xf32>,
    %cst_147 = arith.constant 0.000000e+00 : f32
    %163 = vector.broadcast %cst_147 : f32 to vector<16x128xf32>
    %c0_148 = arith.constant 0 : index
    %c0_149 = arith.constant 0 : index
    %c0_150 = arith.constant 0 : index
    %164 = vector.load %arg16[%c0_148, %c0_149, %c0_150] : memref<1x18x128xf32, #tpu.memory_space<vmem>>, vector<1x16x128xf32>
    %165 = vector.shape_cast %164 : vector<1x16x128xf32> to vector<16x128xf32>
    %c0_151 = arith.constant 0 : index
    %c0_152 = arith.constant 0 : index
    %c0_153 = arith.constant 0 : index
    %166 = vector.load %arg10[%c0_151, %c0_152, %c0_153] : memref<3x128x128xf32, #tpu.memory_space<vmem>>, vector<1x128x128xf32>
    %167 = vector.shape_cast %166 : vector<1x128x128xf32> to vector<128x128xf32>
    %cst_154 = arith.constant dense<0.000000e+00> : vector<16x128xf32>
    %168 = tpu.matmul %165, %167, %cst_154 {dimension_numbers = #tpu.dot_dimension_numbers<[1], [0], [0], [1], [0, 0, 1, 1], [], []>} : vector<16x128xf32>, vector<128x128xf32>, vector<16x128xf32> -> vector<16x128xf32>
    %169 = arith.addf %163, %168 : vector<16x128xf32>
    %c0_155 = arith.constant 0 : index
    %c1_156 = arith.constant 1 : index
    %c0_157 = arith.constant 0 : index
    %170 = vector.load %arg16[%c0_155, %c1_156, %c0_157] : memref<1x18x128xf32, #tpu.memory_space<vmem>>, vector<1x16x128xf32>
    %171 = vector.shape_cast %170 : vector<1x16x128xf32> to vector<16x128xf32>
    %c1_158 = arith.constant 1 : index
    %c0_159 = arith.constant 0 : index
    %c0_160 = arith.constant 0 : index
    %172 = vector.load %arg10[%c1_158, %c0_159, %c0_160] : memref<3x128x128xf32, #tpu.memory_space<vmem>>, vector<1x128x128xf32>
    %173 = vector.shape_cast %172 : vector<1x128x128xf32> to vector<128x128xf32>
    %cst_161 = arith.constant dense<0.000000e+00> : vector<16x128xf32>
    %174 = tpu.matmul %171, %173, %cst_161 {dimension_numbers = #tpu.dot_dimension_numbers<[1], [0], [0], [1], [0, 0, 1, 1], [], []>} : vector<16x128xf32>, vector<128x128xf32>, vector<16x128xf32> -> vector<16x128xf32>
    %175 = arith.addf %169, %174 : vector<16x128xf32>
    %c0_162 = arith.constant 0 : index
    %c2_163 = arith.constant 2 : index
    %c0_164 = arith.constant 0 : index
    %176 = vector.load %arg16[%c0_162, %c2_163, %c0_164] : memref<1x18x128xf32, #tpu.memory_space<vmem>>, vector<1x16x128xf32>
    %177 = vector.shape_cast %176 : vector<1x16x128xf32> to vector<16x128xf32>
    %c2_165 = arith.constant 2 : index
    %c0_166 = arith.constant 0 : index
    %c0_167 = arith.constant 0 : index
    %178 = vector.load %arg10[%c2_165, %c0_166, %c0_167] : memref<3x128x128xf32, #tpu.memory_space<vmem>>, vector<1x128x128xf32>
    %179 = vector.shape_cast %178 : vector<1x128x128xf32> to vector<128x128xf32>
    %cst_168 = arith.constant dense<0.000000e+00> : vector<16x128xf32>
    %180 = tpu.matmul %177, %179, %cst_168 {dimension_numbers = #tpu.dot_dimension_numbers<[1], [0], [0], [1], [0, 0, 1, 1], [], []>} : vector<16x128xf32>, vector<128x128xf32>, vector<16x128xf32> -> vector<16x128xf32>
    %181 = arith.addf %175, %180 : vector<16x128xf32>
    %c0_169 = arith.constant 0 : index
    %c0_170 = arith.constant 0 : index
    %182 = vector.load %arg11[%c0_169, %c0_170] : memref<1x128xf32, #tpu.memory_space<vmem>>, vector<1x128xf32>
    %183 = vector.broadcast %182 : vector<1x128xf32> to vector<16x128xf32>
    %184 = arith.addf %181, %183 : vector<16x128xf32>
    %cst_171 = arith.constant 0.000000e+00 : f32
    %185 = vector.broadcast %cst_171 : f32 to vector<16x128xf32>
    %186 = arith.cmpf ogt, %184, %185 : vector<16x128xf32>
    %cst_172 = arith.constant 0.000000e+00 : f32
    %187 = vector.broadcast %cst_172 : f32 to vector<16x128xf32>
    %188 = arith.minimumf %184, %187 : vector<16x128xf32>
    %189 = math.exp %188 : vector<16x128xf32>
    %cst_173 = arith.constant 1.000000e+00 : f32
    %190 = vector.broadcast %cst_173 : f32 to vector<16x128xf32>
    %191 = arith.subf %189, %190 : vector<16x128xf32>
    %192 = arith.select %186, %184, %191 : vector<16x128xi1>, vector<16x128xf32>
    %cst_174 = arith.constant 0.000000e+00 : f32
    %193 = vector.broadcast %cst_174 : f32 to vector<1x18x128xf32>
    %c0_175 = arith.constant 0 : index
    %c0_176 = arith.constant 0 : index
    %c0_177 = arith.constant 0 : index
    %194 = vector.load %arg15[%c0_175, %c0_176, %c0_177] : memref<1x18x128xf32, #tpu.memory_space<vmem>>, vector<1x18x128xf32>
    tpu.vector_store %arg15[%c0_175, %c0_176, %c0_177], %193 {strides = array<i32>} : memref<1x18x128xf32, #tpu.memory_space<vmem>>, vector<1x18x128xf32>,
    %195 = vector.shape_cast %192 : vector<16x128xf32> to vector<1x16x128xf32>
    %c0_178 = arith.constant 0 : index
    %c1_179 = arith.constant 1 : index
    %c0_180 = arith.constant 0 : index
    %196 = vector.load %arg15[%c0_178, %c1_179, %c0_180] : memref<1x18x128xf32, #tpu.memory_space<vmem>>, vector<1x16x128xf32>
    tpu.vector_store %arg15[%c0_178, %c1_179, %c0_180], %195 {strides = array<i32>} : memref<1x18x128xf32, #tpu.memory_space<vmem>>, vector<1x16x128xf32>,
    %cst_181 = arith.constant 0.000000e+00 : f32
    %197 = vector.broadcast %cst_181 : f32 to vector<16x48xf32>
    %c0_182 = arith.constant 0 : index
    %c0_183 = arith.constant 0 : index
    %c0_184 = arith.constant 0 : index
    %198 = vector.load %arg15[%c0_182, %c0_183, %c0_184] : memref<1x18x128xf32, #tpu.memory_space<vmem>>, vector<1x16x128xf32>
    %199 = vector.shape_cast %198 : vector<1x16x128xf32> to vector<16x128xf32>
    %c0_185 = arith.constant 0 : index
    %c0_186 = arith.constant 0 : index
    %c0_187 = arith.constant 0 : index
    %200 = vector.load %arg12[%c0_185, %c0_186, %c0_187] : memref<3x128x48xf32, #tpu.memory_space<vmem>>, vector<1x128x48xf32>
    %201 = vector.shape_cast %200 : vector<1x128x48xf32> to vector<128x48xf32>
    %cst_188 = arith.constant dense<0.000000e+00> : vector<16x48xf32>
    %202 = tpu.matmul %199, %201, %cst_188 {dimension_numbers = #tpu.dot_dimension_numbers<[1], [0], [0], [1], [0, 0, 1, 1], [], []>} : vector<16x128xf32>, vector<128x48xf32>, vector<16x48xf32> -> vector<16x48xf32>
    %203 = arith.addf %197, %202 : vector<16x48xf32>
    %c0_189 = arith.constant 0 : index
    %c1_190 = arith.constant 1 : index
    %c0_191 = arith.constant 0 : index
    %204 = vector.load %arg15[%c0_189, %c1_190, %c0_191] : memref<1x18x128xf32, #tpu.memory_space<vmem>>, vector<1x16x128xf32>
    %205 = vector.shape_cast %204 : vector<1x16x128xf32> to vector<16x128xf32>
    %c1_192 = arith.constant 1 : index
    %c0_193 = arith.constant 0 : index
    %c0_194 = arith.constant 0 : index
    %206 = vector.load %arg12[%c1_192, %c0_193, %c0_194] : memref<3x128x48xf32, #tpu.memory_space<vmem>>, vector<1x128x48xf32>
    %207 = vector.shape_cast %206 : vector<1x128x48xf32> to vector<128x48xf32>
    %cst_195 = arith.constant dense<0.000000e+00> : vector<16x48xf32>
    %208 = tpu.matmul %205, %207, %cst_195 {dimension_numbers = #tpu.dot_dimension_numbers<[1], [0], [0], [1], [0, 0, 1, 1], [], []>} : vector<16x128xf32>, vector<128x48xf32>, vector<16x48xf32> -> vector<16x48xf32>
    %209 = arith.addf %203, %208 : vector<16x48xf32>
    %c0_196 = arith.constant 0 : index
    %c2_197 = arith.constant 2 : index
    %c0_198 = arith.constant 0 : index
    %210 = vector.load %arg15[%c0_196, %c2_197, %c0_198] : memref<1x18x128xf32, #tpu.memory_space<vmem>>, vector<1x16x128xf32>
    %211 = vector.shape_cast %210 : vector<1x16x128xf32> to vector<16x128xf32>
    %c2_199 = arith.constant 2 : index
    %c0_200 = arith.constant 0 : index
    %c0_201 = arith.constant 0 : index
    %212 = vector.load %arg12[%c2_199, %c0_200, %c0_201] : memref<3x128x48xf32, #tpu.memory_space<vmem>>, vector<1x128x48xf32>
    %213 = vector.shape_cast %212 : vector<1x128x48xf32> to vector<128x48xf32>
    %cst_202 = arith.constant dense<0.000000e+00> : vector<16x48xf32>
    %214 = tpu.matmul %211, %213, %cst_202 {dimension_numbers = #tpu.dot_dimension_numbers<[1], [0], [0], [1], [0, 0, 1, 1], [], []>} : vector<16x128xf32>, vector<128x48xf32>, vector<16x48xf32> -> vector<16x48xf32>
    %215 = arith.addf %209, %214 : vector<16x48xf32>
    %c0_203 = arith.constant 0 : index
    %c0_204 = arith.constant 0 : index
    %216 = vector.load %arg13[%c0_203, %c0_204] : memref<1x48xf32, #tpu.memory_space<vmem>>, vector<1x48xf32>
    %217 = vector.broadcast %216 : vector<1x48xf32> to vector<16x48xf32>
    %218 = arith.addf %215, %217 : vector<16x48xf32>
    %219 = math.tanh %218 : vector<16x48xf32>
    %220 = vector.shape_cast %219 : vector<16x48xf32> to vector<1x16x48xf32>
    %c0_205 = arith.constant 0 : index
    %c0_206 = arith.constant 0 : index
    %c0_207 = arith.constant 0 : index
    %221 = vector.load %arg14[%c0_205, %c0_206, %c0_207] : memref<1x16x48xf32, #tpu.memory_space<vmem>>, vector<1x16x48xf32>
    tpu.vector_store %arg14[%c0_205, %c0_206, %c0_207], %220 {strides = array<i32>} : memref<1x16x48xf32, #tpu.memory_space<vmem>>, vector<1x16x48xf32>,
    return
  }
  func.func @transform_0(%arg0: i32) -> (i32, i32, i32) {
    %c0_i32 = arith.constant 0 : i32
    %c0_i32_0 = arith.constant 0 : i32
    %c0_i32_1 = arith.constant 0 : i32
    return %arg0, %c0_i32, %c0_i32_0 : i32, i32, i32
  }
  func.func @transform_1(%arg0: i32) -> (i32, i32) {
    %c0_i32 = arith.constant 0 : i32
    %c0_i32_0 = arith.constant 0 : i32
    %c0_i32_1 = arith.constant 0 : i32
    return %c0_i32, %c0_i32_0 : i32, i32
  }
  func.func @transform_2(%arg0: i32) -> (i32, i32) {
    %c0_i32 = arith.constant 0 : i32
    %c0_i32_0 = arith.constant 0 : i32
    %c0_i32_1 = arith.constant 0 : i32
    return %c0_i32, %c0_i32_0 : i32, i32
  }
  func.func @transform_3(%arg0: i32) -> (i32, i32, i32) {
    %c0_i32 = arith.constant 0 : i32
    %c0_i32_0 = arith.constant 0 : i32
    %c0_i32_1 = arith.constant 0 : i32
    %c0_i32_2 = arith.constant 0 : i32
    return %c0_i32, %c0_i32_0, %c0_i32_1 : i32, i32, i32
  }
  func.func @transform_4(%arg0: i32) -> (i32, i32) {
    %c0_i32 = arith.constant 0 : i32
    %c0_i32_0 = arith.constant 0 : i32
    %c0_i32_1 = arith.constant 0 : i32
    return %c0_i32, %c0_i32_0 : i32, i32
  }
  func.func @transform_5(%arg0: i32) -> (i32, i32, i32) {
    %c0_i32 = arith.constant 0 : i32
    %c0_i32_0 = arith.constant 0 : i32
    %c0_i32_1 = arith.constant 0 : i32
    %c0_i32_2 = arith.constant 0 : i32
    return %c0_i32, %c0_i32_0, %c0_i32_1 : i32, i32, i32
  }
  func.func @transform_6(%arg0: i32) -> (i32, i32) {
    %c0_i32 = arith.constant 0 : i32
    %c0_i32_0 = arith.constant 0 : i32
    %c0_i32_1 = arith.constant 0 : i32
    return %c0_i32, %c0_i32_0 : i32, i32
  }
  func.func @transform_7(%arg0: i32) -> (i32, i32, i32) {
    %c0_i32 = arith.constant 0 : i32
    %c0_i32_0 = arith.constant 0 : i32
    %c0_i32_1 = arith.constant 0 : i32
    %c0_i32_2 = arith.constant 0 : i32
    return %c0_i32, %c0_i32_0, %c0_i32_1 : i32, i32, i32
  }
  func.func @transform_8(%arg0: i32) -> (i32, i32) {
    %c0_i32 = arith.constant 0 : i32
    %c0_i32_0 = arith.constant 0 : i32
    %c0_i32_1 = arith.constant 0 : i32
    return %c0_i32, %c0_i32_0 : i32, i32
  }
  func.func @transform_9(%arg0: i32) -> (i32, i32, i32) {
    %c0_i32 = arith.constant 0 : i32
    %c0_i32_0 = arith.constant 0 : i32
    %c0_i32_1 = arith.constant 0 : i32
    %c0_i32_2 = arith.constant 0 : i32
    return %c0_i32, %c0_i32_0, %c0_i32_1 : i32, i32, i32
  }
  func.func @transform_10(%arg0: i32) -> (i32, i32) {
    %c0_i32 = arith.constant 0 : i32
    %c0_i32_0 = arith.constant 0 : i32
    %c0_i32_1 = arith.constant 0 : i32
    return %c0_i32, %c0_i32_0 : i32, i32
  }
  func.func @transform_11(%arg0: i32) -> (i32, i32, i32) {
    %c0_i32 = arith.constant 0 : i32
    %c0_i32_0 = arith.constant 0 : i32
    %c0_i32_1 = arith.constant 0 : i32
    %c0_i32_2 = arith.constant 0 : i32
    return %c0_i32, %c0_i32_0, %c0_i32_1 : i32, i32, i32
  }
  func.func @transform_12(%arg0: i32) -> (i32, i32) {
    %c0_i32 = arith.constant 0 : i32
    %c0_i32_0 = arith.constant 0 : i32
    %c0_i32_1 = arith.constant 0 : i32
    return %c0_i32, %c0_i32_0 : i32, i32
  }
  func.func @transform_13(%arg0: i32) -> (i32, i32, i32) {
    %c0_i32 = arith.constant 0 : i32
    %c0_i32_0 = arith.constant 0 : i32
    %c0_i32_1 = arith.constant 0 : i32
    return %arg0, %c0_i32, %c0_i32_0 : i32, i32, i32
  }
}

</mosaic_0001>

<bundles_post_ra>
// kernel: tpu_custom_call.1
= control target key start
LH: loop header
LB: loop body
LE: loop exit
PB: predicated region body
PF: predicated region fallthrough
CT: control target
= control target key end

     0   :  { %s4503_s0 = inlined_call_operand.vmem [shape: f32[2,1,32], index: 0, kind: input, shape index: {}]   ;;  %s4504_s1 = inlined_call_operand.vmem [shape: f32[32,512], index: 1, kind: input, shape index: {}]   ;;  %s4505_s2 = inlined_call_operand.vmem [shape: f32[8,64], index: 2, kind: input, shape index: {}]   ;;  %s4506_s3 = inlined_call_operand.hbm [shape: f32[3,64,64], index: 3, kind: input, shape index: {}]   ;;  %s4507_s4 = inlined_call_operand.vmem [shape: f32[1,64], index: 4, kind: input, shape index: {}]   ;;  %s4508_s5 = inlined_call_operand.hbm [shape: f32[3,64,128], index: 5, kind: input, shape index: {}]   ;;  %s4509_s6 = inlined_call_operand.vmem [shape: f32[1,128], index: 6, kind: input, shape index: {}]   ;;  %s4510_s7 = inlined_call_operand.vmem [shape: f32[3,128,128], index: 7, kind: input, shape index: {}]   ;;  %s4511_s8 = inlined_call_operand.vmem [shape: f32[1,128], index: 8, kind: input, shape index: {}]   ;;  %s4512_s9 = inlined_call_operand.hbm [shape: f32[3,128,128], index: 9, kind: input, shape index: {}]   ;;  %s4513_s10 = inlined_call_operand.vmem [shape: f32[1,128], index: 10, kind: input, shape index: {}]   ;;  %s4514_s11 = inlined_call_operand.vmem [shape: f32[3,128,48], index: 11, kind: input, shape index: {}]   ;;  %s4515_s12 = inlined_call_operand.vmem [shape: f32[1,48], index: 12, kind: input, shape index: {}]   ;;  %s4516_s13 = inlined_call_operand.hbm [shape: f32[2,16,48], index: 13, kind: output, shape index: {}]  }
   0x1   :  { %4529 = sst [smem:[#allocation21_spill]] %s4515_s12 }
   0x2   :  { %4530 = sst [smem:[#allocation22_spill]] %s4516_s13 }
   0x3   :  { %18 = vsyncpa [#allocation5], 0 }
   0x4   :  { %19 = vsyncpa [#allocation8], 0 }
   0x5   :  { %20 = vsyncpa [#allocation6], 0 }
   0x6   :  { %22 = vsyncpa [#allocation6 + $0x1], 0  ;;  %s3827_s25 = smov 0   ;;  %s3829_s26 = smov 0  }
   0x7   :  { %s3831_s27 = smov 0   ;;  %s3833_s28 = smov 0  }
   0x8 LB: > { %4531 = sst [smem:[#allocation14_spill]] %s3731_s25  ;;  %s3848_s29 = sadd.s32 4294967295, %s3743_s28   ;;  %s3743_s28 = sphi %s3833_s28, %s4558_s28   ;;  %s3739_s27 = sphi %s3831_s27, %s4560_s27   ;;  %s3735_s26 = sphi %s3829_s26, %s4562_s26   ;;  %s3731_s25 = sphi %s3827_s25, %s4561_s25  }
   0x9   : > { %4532 = sst [smem:[#allocation15_spill]] %s3739_s27  ;;  %s2352_s30 = sadd.s32 4294967294, %s3743_s28  }
   0xa   : > { %4533 = sst [smem:[#allocation16_spill]] %s3743_s28  ;;  %s3852_s14 = sadd.s32 1, %s3743_s28  }
   0xb   : > { %4534 = sst [smem:[#allocation17_spill]] %s3852_s14  ;;  %s313_s15 = sadd.s32 1, %s3739_s27 }
   0xc   : > { %s310_s16 = ssub.s32 %s3743_s28, %s3852_s14  ;;  %p323_p0 = scmp.ne.s32.totalorder %s3739_s27, %s3735_s26 }
   0xd   : > { %p311_p1 = scmp.eq.s32.totalorder %s310_s16, 0  ;;  %p324_p2 = scmp.eq.s32.totalorder %s3848_s29, 1 }
   0xe   : > { %p329_p3 = scmp.ne.s32.totalorder %s3735_s26, %s3731_s25  ;;  %p330_p4 = scmp.eq.s32.totalorder %s2352_s30, 1 }
   0xf   : > { %s3863_s17 = scalar_select %p311_p1, %s3739_s27, %s313_s15  }
  0x10   : > { %p3865_p5 = por %p324_p2, %p323_p0  ;;  %p3869_p6 = por %p330_p4, %p329_p3 }
  0x11   : > { %4535 = sst [smem:[#allocation18_spill]] %s3863_s17  ;;  %p2353_p7 = scmp.ge.s32.totalorder %s3743_s28, 1 }
  0x12   : > { %s4536_s18 = scalar_select %p3865_p5, 1, 0 }
  0x13   : > { %s4538_s19 = scalar_select %p3869_p6, 1, 0 }
  0x14   : > { %4537 = sst [smem:[#allocation19_spill]] %s4536_s18  ;;  %p337_p8 = scmp.lt.s32.totalorder %s3743_s28, 3 }
  0x15   : > { %4539 = sst [smem:[#allocation20_spill]] %s4538_s19  ;;  %p4522_p9 = scmp.eq.s32.totalorder %s3848_s29, 0 }
  0x16   : > { %p3876_p10 = pnand %p2353_p7, %p337_p8  ;;  %s3745_s21 = smov [#allocation7]  }
  0x17   : > { %s371_s22 = sshll.u32 %s3745_s21, 4  ;;  %s3746_s24 = smov [#allocation4]   ;;  %s3882_s22 = int_to_ptr.vmem [resolvable:$true] %s371_s22 }
  0x18   : > { %s4540_s20 = scalar_select %p3876_p10, 1, 0 }
  0x19   : > { %p3509_p11 = pneg %p3876_p10  ;;  %s355_s30 = sshll.u32 %s3746_s24, 4  ;;  %s3890_s30 = int_to_ptr.vmem [resolvable:$true] %s355_s30 }
  0x1a   : > { %s3747_s15 = smov [#allocation9]   ;;  %s3589_s14 = scalar_lea.hbm %s4508_s5, 3072 }
  0x1b   : > { %p3886_p12 = pnand %p4522_p9, %p3509_p11  ;;  %s3892_s16 = sshll.u32 %s3747_s15, 4  ;;  %s394_s16 = int_to_ptr.vmem [resolvable:$true] %s3892_s16 }
  0x1c   : > { %p3590_p13 = scmp.ne.s32.totalorder %s4508_s5, %s3589_s14  ;;  %p3596_p3 = scmp.lt.u32.totalorder %s3589_s14, %s4508_s5 }
  0x1d   : > { %p3902_p0 = pneg %p3886_p12 }
  0x1f   : > { %p3592_p1 = pnand %p3902_p0, %p3590_p13 }
  0x21   : > { %p3593_p2 = pneg %p3592_p1 }
  0x23   : > { %p3598_p4 = pnand %p3596_p3, %p3593_p2 }
  0x25   : > { %3601 = shalt.err (!%p3598_p4)
}
  0x26   : > { %s3602_s27 = scalar_lea.vmem %s3882_s22, 3072  ;;  %p3610_p9 = scmp.lt.s32.totalorder %s3882_s22, %s3882_s22 }
  0x27   : > { %p3603_p7 = scmp.ne.s32.totalorder %s3882_s22, %s3602_s27  ;;  %p3611_p6 = scmp.lt.s32.totalorder %s3602_s27, %s3602_s27 }
  0x29   : > { %p3605_p8 = pnand %p3603_p7, %p3902_p0  ;;  %p3612_p13 = por %p3611_p6, %p3610_p9 }
  0x2b   : > { %p3606_p11 = pneg %p3605_p8 }
  0x2d   : > { %p3613_p1 = pnand %p3612_p13, %p3606_p11 }
  0x2f   : > { %3616 = shalt.err (!%p3613_p1)
}
  0x30   : > { %s3748_s17 = smov 128   ;;  %s3749_s14 = smov 8  }
  0x31   : > { %3515 = dma.hbm_to_vmem [thread:$0]  (!%p3886_p12), %s4508_s5, 3072, %s3882_s22, [#allocation8], %s3748_s17, %s3748_s17, %s3749_s14  }
  0x32   : > { %s3617_s27 = scalar_lea.hbm %s4506_s3, 3072 }
  0x33   : > { %p3618_p6 = scmp.ne.s32.totalorder %s4506_s3, %s3617_s27  ;;  %p3624_p3 = scmp.lt.u32.totalorder %s3617_s27, %s4506_s3 }
  0x35   : > { %p3620_p9 = pnand %p3618_p6, %p3902_p0 }
  0x37   : > { %p3621_p2 = pneg %p3620_p9 }
  0x39   : > { %p3626_p4 = pnand %p3624_p3, %p3621_p2 }
  0x3b   : > { %3629 = shalt.err (!%p3626_p4)
}
  0x3c   : > { %s3630_s22 = scalar_lea.vmem %s3890_s30, 3072  ;;  %p3638_p13 = scmp.lt.s32.totalorder %s3890_s30, %s3890_s30 }
  0x3d   : > { %p3631_p7 = scmp.ne.s32.totalorder %s3890_s30, %s3630_s22  ;;  %p3639_p1 = scmp.lt.s32.totalorder %s3630_s22, %s3630_s22 }
  0x3f   : > { %p3633_p8 = pnand %p3631_p7, %p3902_p0  ;;  %p3640_p6 = por %p3639_p1, %p3638_p13 }
  0x41   : > { %p3634_p11 = pneg %p3633_p8 }
  0x43   : > { %p3641_p9 = pnand %p3640_p6, %p3634_p11 }
  0x45   : > { %3644 = shalt.err (!%p3641_p9)
}
  0x46   : > { %3512 = dma.hbm_to_vmem [thread:$0]  (!%p3886_p12), %s4506_s3, 3072, %s3890_s30, [#allocation5], %s3748_s17, %s3748_s17, %s3749_s14  }
  0x47   : > { %s3645_s19 = scalar_lea.hbm %s4512_s9, 6144 }
  0x48   : > { %p3646_p2 = scmp.ne.s32.totalorder %s4512_s9, %s3645_s19  ;;  %p3652_p7 = scmp.lt.u32.totalorder %s3645_s19, %s4512_s9 }
  0x4a   : > { %p3648_p3 = pnand %p3646_p2, %p3902_p0 }
  0x4c   : > { %p3649_p4 = pneg %p3648_p3 }
  0x4e   : > { %p3654_p8 = pnand %p3652_p7, %p3649_p4 }
  0x50   : > { %3657 = shalt.err (!%p3654_p8)
}
  0x51   : > { %s3658_s22 = scalar_lea.vmem %s394_s16, 6144  ;;  %p3666_p6 = scmp.lt.s32.totalorder %s394_s16, %s394_s16 }
  0x52   : > { %p3659_p11 = scmp.ne.s32.totalorder %s394_s16, %s3658_s22  ;;  %p3667_p9 = scmp.lt.s32.totalorder %s3658_s22, %s3658_s22 }
  0x54   : > { %p3661_p13 = pnand %p3659_p11, %p3902_p0  ;;  %p3668_p5 = por %p3667_p9, %p3666_p6 }
  0x56   : > { %p3662_p1 = pneg %p3661_p13 }
  0x58   : > { %p3669_p10 = pnand %p3668_p5, %p3662_p1 }
  0x5a   : > { %3672 = shalt.err (!%p3669_p10)
}
  0x5b   : > { %3518 = dma.hbm_to_vmem [thread:$0]  (!%p3886_p12), %s4512_s9, 6144, %s394_s16, [#allocation8], %s3748_s17, %s3748_s17, %s3749_s14  }
  0x5c   : > { %p4543_p2 = scmp.ne.s32.totalorder %s4540_s20, 0 }
  0x5d   : > { %p4544_p0 = scmp.eq.s32.totalorder (!%p4543_p2), %s3848_s29, 0 }
  0x5e   : > { %424 = sbr.rel (%p4543_p2) target bundleno = 2078 (0x81e), region = 72 }
  0x65   : > { %3718 = dma.done.wait (%p4544_p0), [#allocation5], 3072   ;;  %p4545_p3 = pmov %p4544_p0 }
  0x66   : > { %p4546_p5 = pmov %p4544_p0 }
  0x67   : > { %3720 = vsyncadd (%p4545_p3), [#allocation5], 4294964224 }
  0x68   : > { %3722 = dma.done.wait (%p4546_p5), [#allocation8], 9216   ;;  %p4547_p10 = pmov %p4544_p0 }
  0x69   : > { %v3750_v0 = vmov 0.0   ;;  %p474_p12 = scmp.lt.s32.totalorder %s3848_s29, 1  ;;  %v482_v1 = vld [vmem:[%s4504_s1 + $0x8] sm:$0xff]  ;;  %v481_v3 = vld [vmem:[%s4504_s1] sm:$0xff]  ;;  %v484_v6 = vld [vmem:[%s4504_s1 + $0x18] sm:$0xff]  ;;  %s3751_s14 = smov 64  }
  0x6a   : > { %3724 = vsyncadd (%p4547_p10), [#allocation8], 4294958080  ;;  %565 = vmatprep.mubr.f32.mxu0 %v3750_v0  ;;  %477 = vst [vmem:[#allocation2] sm:$0xff] %v3750_v0  ;;  %636 = vmatprep.mubr.f32.mxu1 %v3750_v0  ;;  %v486_v2 = vld [vmem:[%s4504_s1 + $0x28] sm:$0xff]  ;;  %v485_v5 = vld [vmem:[%s4504_s1 + $0x20] sm:$0xff]  ;;  %vm497_vm0 = vcmask 261120  }
  0x6b   : > { %478 = vst [vmem:[#allocation2 + $0x8] sm:$0xff] %v3750_v0  ;;  %479 = vst [vmem:[#allocation2 + $0x10] sm:$0x3] %v3750_v0  ;;  %v3107_v4 = vpack.c.bf16 %v486_v2, %v482_v1  ;;  %v488_v7 = vld [vmem:[%s4504_s1 + $0x38] sm:$0xff]  ;;  %s4014_s15 = scalar_select %p474_p12, %s3848_s29, 1  ;;  %v3109_v8 = vpack.c.bf16 %v485_v5, %v481_v3  ;;  %v483_v10 = vld [vmem:[%s4504_s1 + $0x10] sm:$0xff] }
  0x6c   : > { %964 = vst [vmem:[#allocation3] sm:$0xff] %v3750_v0  ;;  %965 = vst [vmem:[#allocation3 + $0x8] sm:$0xff] %v3750_v0  ;;  %v3115_v9 = vpack.c.bf16 %v488_v7, %v484_v6  ;;  %v487_v11 = vld [vmem:[%s4504_s1 + $0x30] sm:$0xff]  ;;  %v490_v12 = vld [vmem:[%s4504_s1 + $0x48] sm:$0xff]  ;;  %v3752_v32 = vmov 0.0|0.0   ;;  %vm3753_vm1 = vmmov 0  }
  0x6d   : > { %966 = vst [vmem:[#allocation3 + $0x10] sm:$0x3] %v3750_v0  ;;  %1233 = vst [vmem:[#allocation2 + $0x10] sm:$0x3] %v3750_v0  ;;  %3108 = vmatprep.subr.bf16.mxu0 %v3107_v4  ;;  %v3117_v13 = vpack.c.bf16 %v487_v11, %v483_v10  ;;  %v494_v14 = vld [vmem:[%s4504_s1 + $0x68] sm:$0xff]  ;;  %v489_v15 = vld [vmem:[%s4504_s1 + $0x40] sm:$0xff]  ;;  %s476_s23 = scalar_lea.vmem %s4503_s0, %s4014_s15 }
  0x6e   : > { %1639 = vst [vmem:[#allocation3 + $0x10] sm:$0x3] %v3750_v0  ;;  %v493_v16 = vld [vmem:[%s4504_s1 + $0x60] sm:$0xff]  ;;  %3110 = vmatpush1.bf16.msra.mxu0 %v3109_v8  ;;  %3116 = vmatprep.subr.bf16.mxu1 %v3115_v9  ;;  %v3111_v17 = vpack.c.bf16 %v494_v14, %v490_v12  ;;  %v492_v19 = vld [vmem:[%s4504_s1 + $0x58] sm:$0xff]  ;;  %v491_v21 = vld [vmem:[%s4504_s1 + $0x50] sm:$0xff]  ;;  %vm645_vm2 = vcmask 516096  }
  0x6f   : > { %v3113_v18 = vpack.c.bf16 %v493_v16, %v489_v15  ;;  %v496_v20 = vld [vmem:[%s4504_s1 + $0x78] sm:$0xff]  ;;  %3118 = vmatpush1.bf16.msra.mxu1 %v3117_v13  ;;  %v495_v23 = vld [vmem:[%s4504_s1 + $0x70] sm:$0xff]  ;;  %v647_v24 = vld [vmem:[%s4505_s2 + $0x1] sm:$0x1]  ;;  %vm719_vm3 = vcmask 523264   ;;  %vm1249_vm10 = vcmask 64512  }
  0x70   : > { %v3119_v22 = vpack.c.bf16 %v496_v20, %v492_v19  ;;  %3112 = vmatprep.subr.bf16.mxu0 %v3111_v17  ;;  %v3121_v25 = vpack.c.bf16 %v495_v23, %v491_v21  ;;  %649 = vrot.lane.b32.xlu0 %v647_v24, %s3751_s14  ;;  %v675_v26 = vld [vmem:[%s4505_s2 + $0x5] sm:$0x1]  ;;  %v661_v27 = vld [vmem:[%s4505_s2 + $0x3] sm:$0x1]  ;;  %v480_v28 = vld [vmem:[%s476_s23] sm:$0x1] }
  0x71   : > { %677 = vrot.lane.b32.xlu1 %v675_v26, %s3751_s14  ;;  %v689_v29 = vld [vmem:[%s4505_s2 + $0x7] sm:$0x1]  ;;  %v711_v30 = vld [vmem:[#allocation4 + $0x40] sm:$0xff]  ;;  %v712_v31 = vld [vmem:[#allocation4 + $0x48] sm:$0xff]  ;;  %s4550_s20 = sld [smem:[#allocation21_spill]]  ;;  %s471_s23 = sand.u32 1, %s3735_s26  }
  0x72   : > { %3120 = vmatprep.subr.bf16.mxu1 %v3119_v22  ;;  %3114 = vmatpush1.bf16.msra.mxu0 %v3113_v18  ;;  %v3124_v33 = vpack.c.bf16 %v712_v31, %v711_v30  ;;  %v713_v34 = vld [vmem:[#allocation4 + $0x50] sm:$0xff]  ;;  %v714_v35 = vld [vmem:[#allocation4 + $0x58] sm:$0xff]  ;;  %v715_v37 = vld [vmem:[#allocation4 + $0x60] sm:$0xff]  ;;  %s4551_s16 = sld [smem:[#allocation19_spill]]  ;;  %s2362_s17 = sshll.u32 %s471_s23, 4 }
  0x73   : > { %3122 = vmatpush1.bf16.msra.mxu1 %v3121_v25  ;;  %3123 = vmatprep.subr.bf16.mxu0 %v3752_v32  ;;  %v3127_v36 = vpack.c.bf16 %v714_v35, %v713_v34  ;;  %v716_v38 = vld [vmem:[#allocation4 + $0x68] sm:$0xff]  ;;  %v717_v42 = vld [vmem:[#allocation4 + $0x70] sm:$0xff]  ;;  %v718_v43 = vld [vmem:[#allocation4 + $0x78] sm:$0xff]  ;;  %s473_s13 = scalar_lea.vmem [#allocation10], %s2362_s17  ;;  %s4552_s15 = sld [smem:[#allocation22_spill]] }
  0x74   : > { %663 = vrot.lane.b32.xlu0 %v661_v27, %s3751_s14  ;;  %3159 = vmatprep.subr.bf16.mxu1 %v3752_v32  ;;  %v3130_v40 = vpack.c.bf16 %v716_v38, %v715_v37  ;;  %v3133_v44 = vpack.c.bf16 %v718_v43, %v717_v42  ;;  %v643_v45 = vld [vmem:[%s4505_s2] sm:$0x1]  ;;  %v658_v47 = vld [vmem:[%s4505_s2 + $0x2] sm:$0x1]  ;;  %v672_v48 = vld [vmem:[%s4505_s2 + $0x4] sm:$0x1] }
  0x75   : > { %2363 = vmatmul.mubr.msk.f32.vlgmr.msra.gmra.mrb[0].mxu0 %vm497_vm0, %v480_v28  ;;  %691 = vrot.lane.b32.xlu1 %v689_v29, %s3751_s14  ;;  %v686_v51 = vld [vmem:[%s4505_s2 + $0x6] sm:$0x1]  ;;  %v701_v4 = vld [vmem:[#allocation4] sm:$0xff]  ;;  %v702_v5 = vld [vmem:[#allocation4 + $0x8] sm:$0xff]  ;;  %s2262_s28 = sshll.u32 %s473_s13, 4  ;;  %s4462_s24 = scalar_lea.sflag [#allocation6], %s471_s23  ;;  %s4460_s28 = int_to_ptr.vmem [resolvable:$true] %s2262_s28 }
  0x76   : > { %2364 = vmatmul.mubr.msk.f32.vlgmr.msra.gmra.mrb[0].mxu1 %vm497_vm0, %v480_v28  ;;  %3125 = vmatpush3.bf16.msra.mxu0 %v3124_v33  ;;  %v3136_v6 = vpack.c.bf16 %v702_v5, %v701_v4  ;;  %v703_v7 = vld [vmem:[#allocation4 + $0x10] sm:$0xff]  ;;  %v704_v8 = vld [vmem:[#allocation4 + $0x18] sm:$0xff]  ;;  %v705_v13 = vld [vmem:[#allocation4 + $0x20] sm:$0xff]  ;;  %s3754_s27 = smov [#allocation10]  }
  0x77   : > { %3126 = vmatprep.subr.bf16.mxu0 %v3752_v32  ;;  %2689 = vmatprep.mubr.msk.f32.mxu0 %vm3753_vm1, %v3750_v0  ;;  %v3139_v12 = vpack.c.bf16 %v704_v8, %v703_v7  ;;  %v706_v14 = vld [vmem:[#allocation4 + $0x28] sm:$0xff]  ;;  %v707_v16 = vld [vmem:[#allocation4 + $0x30] sm:$0xff]  ;;  %v708_v17 = vld [vmem:[#allocation4 + $0x38] sm:$0xff]  ;;  %s3677_s22 = sshll.u32 %s3754_s27, 4  ;;  %s3678_s22 = int_to_ptr.vmem [resolvable:$false] %s3677_s22 }
  0x78   : > { %2746 = vmatprep.mubr.msk.f32.mxu1 %vm3753_vm1, %v3750_v0  ;;  %v3142_v15 = vpack.c.bf16 %v706_v14, %v705_v13  ;;  %v3145_v18 = vpack.c.bf16 %v708_v17, %v707_v16  ;;  %v868_v19 = vld [vmem:[#allocation4 + $0x80] sm:$0xff]  ;;  %v869_v20 = vld [vmem:[#allocation4 + $0x88] sm:$0xff]  ;;  %v870_v22 = vld [vmem:[#allocation4 + $0x90] sm:$0xff]  ;;  %p4553_p7 = scmp.ne.s32.totalorder %s4551_s16, 0  ;;  %s3679_s30 = scalar_lea.vmem %s3678_s22, 512 }
  0x79   : > { %v3148_v21 = vpack.c.bf16 %v869_v20, %v868_v19  ;;  %v871_v23 = vld [vmem:[#allocation4 + $0x98] sm:$0xff]  ;;  %v872_v25 = vld [vmem:[#allocation4 + $0xa0] sm:$0xff]  ;;  %v873_v26 = vld [vmem:[#allocation4 + $0xa8] sm:$0xff]  ;;  %p3680_p13 = scmp.lt.s32.totalorder %s4460_s28, %s3678_s22 }
  0x7a   : > { %3128 = vmatpush3.bf16.msra.mxu0 %v3127_v36  ;;  %v3151_v24 = vpack.c.bf16 %v871_v23, %v870_v22  ;;  %v3154_v27 = vpack.c.bf16 %v873_v26, %v872_v25  ;;  %v874_v28 = vld [vmem:[#allocation4 + $0xb0] sm:$0xff]  ;;  %v875_v29 = vld [vmem:[#allocation4 + $0xb8] sm:$0xff]  ;;  %v979_v31 = vld [vmem:[#allocation7 + $0x40] sm:$0xff]  ;;  %v1234_v23 = vlaneseq }
  0x7b   : > { %3129 = vmatprep.subr.bf16.mxu0 %v3752_v32  ;;  %v3157_v30 = vpack.c.bf16 %v875_v29, %v874_v28  ;;  %v980_v33 = vld [vmem:[#allocation7 + $0x48] sm:$0xff]  ;;  %v969_v35 = vld [vmem:[#allocation7] sm:$0xff]  ;;  %v981_v38 = vld [vmem:[#allocation7 + $0x50] sm:$0xff] }
  0x7c   : > { %v3160_v34 = vpack.c.bf16 %v980_v33, %v979_v31  ;;  %v970_v36 = vld [vmem:[#allocation7 + $0x8] sm:$0xff]  ;;  %v972_v42 = vld [vmem:[#allocation7 + $0x18] sm:$0xff]  ;;  %v1135_v8 = vld [vmem:[#allocation7 + $0x80] sm:$0xff]  ;;  %v1235_v26 = vshrl.u32 %v1234_v23, 7 }
  0x7d   : > { %v3172_v37 = vpack.c.bf16 %v970_v36, %v969_v35  ;;  %v1139_v17 = vld [vmem:[#allocation7 + $0xa0] sm:$0xff]  ;;  %v1141_v20 = vld [vmem:[#allocation7 + $0xb0] sm:$0xff]  ;;  %v1336_v31 = vld [vmem:[%s4510_s7 + $0x8] sm:$0xff] }
  0x7e   : > { %3131 = vmatpush3.bf16.msra.mxu0 %v3130_v40  ;;  %3161 = vmatpush3.bf16.msra.mxu1 %v3160_v34  ;;  %v1236_v28 = vadd.s32 8, %v1235_v26  ;;  %v1337_v34 = vld [vmem:[%s4510_s7 + $0x10] sm:$0xff]  ;;  %v1338_v35 = vld [vmem:[%s4510_s7 + $0x18] sm:$0xff] }
  0x7f   : > { %3132 = vmatprep.subr.bf16.mxu0 %v3752_v32  ;;  %3162 = vmatprep.subr.bf16.mxu1 %v3752_v32  ;;  %v3231_v36 = vpack.c.bf16 %v1338_v35, %v1337_v34 }
  0x82   : > { %3134 = vmatpush3.bf16.msra.mxu0 %v3133_v44  ;;  %v983_v44 = vld [vmem:[#allocation7 + $0x60] sm:$0xff] }
  0x83   : > { %3135 = vmatprep.subr.bf16.mxu0 %v3752_v32 }
  0xe2   : > { %v650_v39 = vpop.permute.xlu0 %649 }
  0xe3   : > { %v678_v41 = vpop.permute.xlu1 %677 }
  0xe6   : > { %v664_v46 = vpop.permute.xlu0 %663 }
  0xe7   : > { %v692_v50 = vpop.permute.xlu1 %691 }
 0x148   : > { %v567_v49 = vpop.f32.mrb[0].mxu0 }
 0x149   : > { %v644_v52 = vadd.f32 %v643_v45, %v567_v49  ;;  %v652_v53 = vadd.f32 %v650_v39, %v567_v49  ;;  %v569_v54 = vpop.f32.mrb[1].mxu0  ;;  %v638_v55 = vpop.f32.mrb[0].mxu1  ;;  %v982_v39 = vld [vmem:[#allocation7 + $0x58] sm:$0xff]  ;;  %v984_v45 = vld [vmem:[#allocation7 + $0x68] sm:$0xff] }
 0x14a   : > { %v659_v56 = vadd.f32 %v658_v47, %v569_v54  ;;  %v666_v57 = vadd.f32 %v664_v46, %v569_v54  ;;  %v673_v58 = vadd.f32 %v672_v48, %v638_v55  ;;  %v640_v59 = vpop.f32.mrb[1].mxu1  ;;  %v680_v62 = vadd.f32 %v678_v41, %v638_v55  ;;  %v971_v41 = vld [vmem:[#allocation7 + $0x10] sm:$0xff]  ;;  %v973_v47 = vld [vmem:[#allocation7 + $0x20] sm:$0xff]  ;;  %v974_v48 = vld [vmem:[#allocation7 + $0x28] sm:$0xff] }
 0x14b   : > { %646 = vst.msk [vmem:[#allocation2 + $0x1] sm:$0x1] %vm645_vm2, %v644_v52  ;;  %654 = vrot.lane.b32.xlu0 %v652_v53, %s3751_s14  ;;  %v687_v60 = vadd.f32 %v686_v51, %v640_v59  ;;  %v694_v61 = vadd.f32 %v692_v50, %v640_v59  ;;  %v3163_v40 = vpack.c.bf16 %v982_v39, %v981_v38  ;;  %v985_v50 = vld [vmem:[#allocation7 + $0x70] sm:$0xff]  ;;  %v986_v51 = vld [vmem:[#allocation7 + $0x78] sm:$0xff] }
 0x14c   : > { %660 = vst.msk [vmem:[#allocation2 + $0x3] sm:$0x1] %vm645_vm2, %v659_v56  ;;  %674 = vst.msk [vmem:[#allocation2 + $0x5] sm:$0x1] %vm645_vm2, %v673_v58  ;;  %668 = vrot.lane.b32.xlu1 %v666_v57, %s3751_s14  ;;  %v3175_v43 = vpack.c.bf16 %v972_v42, %v971_v41  ;;  %v3166_v46 = vpack.c.bf16 %v984_v45, %v983_v44  ;;  %v3178_v49 = vpack.c.bf16 %v974_v48, %v973_v47  ;;  %v975_v52 = vld [vmem:[#allocation7 + $0x30] sm:$0xff]  ;;  %v976_v54 = vld [vmem:[#allocation7 + $0x38] sm:$0xff] }
 0x14d   : > { %688 = vst.msk [vmem:[#allocation2 + $0x7] sm:$0x1] %vm645_vm2, %v687_v60  ;;  %3164 = vmatpush3.bf16.msra.mxu1 %v3163_v40  ;;  %v3169_v53 = vpack.c.bf16 %v986_v51, %v985_v50  ;;  %v3181_v55 = vpack.c.bf16 %v976_v54, %v975_v52  ;;  %v1340_v38 = vld [vmem:[%s4510_s7 + $0x28] sm:$0xff]  ;;  %v1341_v40 = vld [vmem:[%s4510_s7 + $0x30] sm:$0xff]  ;;  %v1342_v41 = vld [vmem:[%s4510_s7 + $0x38] sm:$0xff] }
 0x14e   : > { %3165 = vmatprep.subr.bf16.mxu1 %v3752_v32  ;;  %v3239_v42 = vpack.c.bf16 %v1342_v41, %v1341_v40  ;;  %v1344_v44 = vld [vmem:[%s4510_s7 + $0x48] sm:$0xff]  ;;  %v1346_v47 = vld [vmem:[%s4510_s7 + $0x58] sm:$0xff] }
 0x14f   : > { %682 = vrot.lane.b32.xlu0 %v680_v62, %s3751_s14  ;;  %v2368_v62 = vld [vmem:[%s4507_s4] ss:$0 sm:$0xff] }
 0x150   : > { %696 = vrot.lane.b32.xlu1 %v694_v61, %s3751_s14  ;;  %s2453_s14 = sshll.u32 %s3848_s29, 8  ;;  %s3673_s29 = scalar_lea.vmem %s4460_s28, 256 }
 0x151   : > { %3167 = vmatpush3.bf16.msra.mxu1 %v3166_v46  ;;  %v1345_v46 = vld [vmem:[%s4510_s7 + $0x50] sm:$0xff]  ;;  %s4458_s21 = scalar_lea.hbm %s4552_s15, %s2453_s14  ;;  %p3674_p4 = scmp.ne.s32.totalorder %s4460_s28, %s3673_s29 }
 0x152   : > { %3168 = vmatprep.subr.bf16.mxu1 %v3752_v32  ;;  %v3247_v48 = vpack.c.bf16 %v1346_v47, %v1345_v46  ;;  %v2399_v47 = vld [vmem:[%s4510_s7 + $0x130] sm:$0xff]  ;;  %p3681_p1 = scmp.lt.s32.totalorder %s3679_s30, %s3673_s29 }
 0x153   : > { %p3675_p8 = pnand %p3674_p4, %p4553_p7 }
 0x154   : > { %p3682_p6 = por %p3681_p1, %p3680_p13 }
 0x155   : > { %3170 = vmatpush3.bf16.msra.mxu1 %v3169_v53  ;;  %p3676_p11 = pneg %p3675_p8 }
 0x156   : > { %3183 = vmatprep.subr.bf16.mxu1 %v3752_v32 }
 0x157   : > { %p3683_p9 = pnand %p3682_p6, %p3676_p11 }
 0x1bd   : > { %v655_v63 = vpop.permute.xlu0 %654 }
 0x1be   : > { %657 = vst.msk [vmem:[#allocation2 + $0x2] sm:$0x1] %vm645_vm2, %v655_v63  ;;  %v669_v1 = vpop.permute.xlu1 %668 }
 0x1bf   : > { %671 = vst.msk [vmem:[#allocation2 + $0x4] sm:$0x1] %vm645_vm2, %v669_v1 }
 0x1c1   : > { %v683_v2 = vpop.permute.xlu0 %682 }
 0x1c2   : > { %685 = vst.msk [vmem:[#allocation2 + $0x6] sm:$0x1] %vm645_vm2, %v683_v2  ;;  %v697_v3 = vpop.permute.xlu1 %696 }
 0x1c3   : > { %699 = vst.msk [vmem:[#allocation2 + $0x8] sm:$0x1] %vm645_vm2, %v697_v3 }
 0x1c9   : > { %v700_v10 = vld [vmem:[#allocation2] sm:$0xff] }
 0x1ca   : > { %v709_v9 = vld [vmem:[#allocation2 + $0x1] sm:$0xff] }
 0x1cb   : > { %v866_v11 = vld [vmem:[#allocation2 + $0x2] sm:$0xff]  ;;  %2690 = vmatmul.mubr.msk.f32.vlgmr.msra.gmra.mrb[2].mxu0 %vm719_vm3, %v709_v9  ;;  %v1136_v9 = vld [vmem:[#allocation7 + $0x88] sm:$0xff] }
 0x1cc   : > { %1231 = vst [vmem:[#allocation2] sm:$0xff] %v3750_v0  ;;  %1232 = vst [vmem:[#allocation2 + $0x8] sm:$0xff] %v3750_v0  ;;  %3137 = vmatpush3.bf16.msra.mxu0 %v3136_v6  ;;  %2708 = vmatprep.mubr.msk.f32.mxu0 %vm3753_vm1, %v3750_v0 }
 0x1cd   : > { %3138 = vmatprep.subr.bf16.mxu0 %v3752_v32 }
 0x1d0   : > { %3140 = vmatpush3.bf16.msra.mxu0 %v3139_v12  ;;  %v1138_v12 = vld [vmem:[#allocation7 + $0x98] sm:$0xff] }
 0x1d1   : > { %3141 = vmatprep.subr.bf16.mxu0 %v3752_v32 }
 0x1d4   : > { %3143 = vmatpush3.bf16.msra.mxu0 %v3142_v15 }
 0x1d5   : > { %3144 = vmatprep.subr.bf16.mxu0 %v3752_v32 }
 0x1d8   : > { %3146 = vmatpush3.bf16.msra.mxu0 %v3145_v18  ;;  %v1140_v18 = vld [vmem:[#allocation7 + $0xa8] sm:$0xff] }
 0x1d9   : > { %3147 = vmatprep.subr.bf16.mxu0 %v3752_v32  ;;  %v3190_v19 = vpack.c.bf16 %v1140_v18, %v1139_v17  ;;  %v2387_v17 = vld [vmem:[%s4510_s7 + $0xd0] sm:$0xff]  ;;  %v2388_v18 = vld [vmem:[%s4510_s7 + $0xd8] sm:$0xff] }
 0x1db   : > { %2709 = vmatmul.mubr.msk.f32.vlgmr.msra.gmra.mrb[4].mxu0 %vm719_vm3, %v700_v10  ;;  %v3184_v10 = vpack.c.bf16 %v1136_v9, %v1135_v8  ;;  %v2381_v8 = vld [vmem:[%s4510_s7 + $0xa0] sm:$0xff]  ;;  %v2382_v9 = vld [vmem:[%s4510_s7 + $0xa8] sm:$0xff] }
 0x1dc   : > { %3149 = vmatpush3.bf16.msra.mxu0 %v3148_v21  ;;  %2727 = vmatprep.mubr.msk.f32.mxu0 %vm3753_vm1, %v3750_v0  ;;  %v1142_v21 = vld [vmem:[#allocation7 + $0xb8] sm:$0xff] }
 0x1dd   : > { %3150 = vmatprep.subr.bf16.mxu0 %v3752_v32  ;;  %v3193_v22 = vpack.c.bf16 %v1142_v21, %v1141_v20  ;;  %v2389_v20 = vld [vmem:[%s4510_s7 + $0xe0] sm:$0xff]  ;;  %v2390_v21 = vld [vmem:[%s4510_s7 + $0xe8] sm:$0xff] }
 0x1e0   : > { %3152 = vmatpush3.bf16.msra.mxu0 %v3151_v24  ;;  %v1238_v24 = vand.u32 127, %v1234_v23  ;;  %v2391_v23 = vld [vmem:[%s4510_s7 + $0xf0] sm:$0xff] }
 0x1e1   : > { %3153 = vmatprep.subr.bf16.mxu0 %v3752_v32 }
 0x1e2   : > { %v1239_v25 = vmul.u32 2, %v1238_v24  ;;  %v2392_v24 = vld [vmem:[%s4510_s7 + $0xf8] sm:$0xff] }
 0x1e4   : > { %3155 = vmatpush3.bf16.msra.mxu0 %v3154_v27  ;;  %v1242_v27 = vadd.s32 2, %v1239_v25  ;;  %vm1240_vm5 = vcmp.ge.s32.totalorder %v1235_v26, %v1239_v25  ;;  %vm1241_vm8 = vcmp.ge.s32.totalorder %v1236_v28, %v1239_v25  ;;  %v3223_v25 = vpack.c.bf16 %v2392_v24, %v2391_v23  ;;  %v1645_v23 = vld [vmem:[#allocation9 + $0x8] sm:$0xff] }
 0x1e5   : > { %3156 = vmatprep.subr.bf16.mxu0 %v3752_v32 }
 0x1e6   : > { %vm1243_vm6 = vcmp.lt.s32.totalorder %v1235_v26, %v1242_v27  ;;  %vm1244_vm9 = vcmp.lt.s32.totalorder %v1236_v28, %v1242_v27  ;;  %v1347_v26 = vld [vmem:[%s4510_s7 + $0x60] sm:$0xff]  ;;  %v1348_v27 = vld [vmem:[%s4510_s7 + $0x68] sm:$0xff] }
 0x1e7   : > { %vm1245_vm7 = vmand %vm1240_vm5, %vm1243_vm6  ;;  %v3251_v28 = vpack.c.bf16 %v1348_v27, %v1347_v26  ;;  %v2415_v27 = vld [vmem:[%s4514_s11 + $0x80] sm:$0xff] }
 0x1e8   : > { %3158 = vmatpush3.bf16.msra.mxu0 %v3157_v30  ;;  %v1247_v29 = vsel %vm1245_vm7, 1.0, %v3750_v0  ;;  %vm4141_vm11 = vmand %vm1241_vm8, %vm1244_vm9  ;;  %v1350_v30 = vld [vmem:[%s4510_s7 + $0x78] sm:$0xff] }
 0x1e9   : > { %3171 = vmatprep.subr.bf16.mxu0 %v3752_v32 }
 0x1eb   : > { %2728 = vmatmul.mubr.msk.f32.vlgmr.msra.gmra.mrb[6].mxu0 %vm719_vm3, %v866_v11  ;;  %v1137_v11 = vld [vmem:[#allocation7 + $0x90] sm:$0xff] }
 0x1ec   : > { %2765 = vmatprep.mubr.msk.f32.mxu0 %vm3753_vm1, %v3750_v0  ;;  %3173 = vmatpush3.bf16.msra.mxu0 %v3172_v37  ;;  %v3187_v16 = vpack.c.bf16 %v1138_v12, %v1137_v11  ;;  %v1339_v37 = vld [vmem:[%s4510_s7 + $0x20] sm:$0xff]  ;;  %v2383_v11 = vld [vmem:[%s4510_s7 + $0xb0] sm:$0xff]  ;;  %v2384_v12 = vld [vmem:[%s4510_s7 + $0xb8] sm:$0xff] }
 0x1ed   : > { %3174 = vmatprep.subr.bf16.mxu0 %v3752_v32  ;;  %v3235_v39 = vpack.c.bf16 %v1340_v38, %v1339_v37  ;;  %v2395_v37 = vld [vmem:[%s4510_s7 + $0x110] sm:$0xff]  ;;  %v2396_v38 = vld [vmem:[%s4510_s7 + $0x118] sm:$0xff] }
 0x1f0   : > { %3176 = vmatpush3.bf16.msra.mxu0 %v3175_v43  ;;  %v1343_v43 = vld [vmem:[%s4510_s7 + $0x40] sm:$0xff] }
 0x1f1   : > { %3177 = vmatprep.subr.bf16.mxu0 %v3752_v32  ;;  %v3243_v45 = vpack.c.bf16 %v1344_v44, %v1343_v43  ;;  %v3263_v43 = vpack.c.bf16 %v2396_v38, %v2395_v37  ;;  %v2397_v44 = vld [vmem:[%s4510_s7 + $0x120] sm:$0xff] }
 0x1f4   : > { %3179 = vmatpush3.bf16.msra.mxu0 %v3178_v49 }
 0x1f5   : > { %3180 = vmatprep.subr.bf16.mxu0 %v3752_v32 }
 0x1f8   : > { %3182 = vmatpush3.bf16.msra.mxu0 %v3181_v55  ;;  %v2373_v55 = vld [vmem:[%s4509_s6] ss:$0 sm:$0xff] }
 0x29e   : > { %v789_v56 = vpop.f32.mrb[2].mxu0 }
 0x29f   : > { %v2691_v57 = vpop.f32.mrb[3].mxu0 }
 0x2ae   : > { %v862_v58 = vpop.f32.mrb[4].mxu0 }
 0x2af   : > { %v863_v59 = vadd.f32 %v862_v58, %v789_v56  ;;  %v2710_v60 = vpop.f32.mrb[5].mxu0 }
 0x2be   : > { %v945_v61 = vpop.f32.mrb[6].mxu0 }
 0x2bf   : > { %v949_v63 = vadd.f32 %v945_v61, %v863_v59  ;;  %v2729_v1 = vpop.f32.mrb[7].mxu0  ;;  %v2377_v61 = vld [vmem:[%s4510_s7 + $0x80] sm:$0xff] }
 0x2c1   : > { %v957_v2 = vadd.f32 %v2368_v62, %v949_v63  ;;  %v2378_v62 = vld [vmem:[%s4510_s7 + $0x88] sm:$0xff] }
 0x2c3   : > { %v959_v3 = vmin.f32 %v957_v2, 0.0  ;;  %vm958_vm4 = vcmp.gt.f32.partialorder %v957_v2, 0.0 }
 0x2c5   : > { %v960_v4 = vmul.f32 1.442695, %v959_v3  ;;  %v2380_v3 = vld [vmem:[%s4510_s7 + $0x98] sm:$0xff] }
 0x2c7   : > { %3573 = vpow2.f32 %v960_v4  ;;  %v3195_v4 = vpack.c.bf16 %v2378_v62, %v2377_v61  ;;  %v1663_v61 = vld [vmem:[#allocation9 + $0x80] sm:$0xff]  ;;  %v1664_v62 = vld [vmem:[#allocation9 + $0x88] sm:$0xff] }
 0x2d1   : > { %v3574_v5 = vpop.eup %3573 }
 0x2d2   : > { %v2369_v6 = vadd.f32 -1.0, %v3574_v5 }
 0x2d4   : > { %v963_v7 = vsel %vm958_vm4, %v957_v2, %v2369_v6  ;;  %v2379_v2 = vld [vmem:[%s4510_s7 + $0x90] sm:$0xff]  ;;  %v1248_v6 = vsel %vm4141_vm11, 1.0, %v3750_v0 }
 0x2d5   : > { %967 = vst.msk [vmem:[#allocation3 + $0x1] sm:$0xff] %vm719_vm3, %v963_v7  ;;  %v3199_v7 = vpack.c.bf16 %v2380_v3, %v2379_v2  ;;  %v1666_v2 = vld [vmem:[#allocation9 + $0x98] sm:$0xff] }
 0x2dc   : > { %v977_v13 = vld [vmem:[#allocation3 + $0x1] sm:$0xff] }
 0x2dd   : > { %v968_v14 = vld [vmem:[#allocation3] sm:$0xff]  ;;  %2747 = vmatmul.mubr.msk.f32.vlgmr.msra.gmra.mrb[2].mxu1 %vm719_vm3, %v977_v13  ;;  %v3207_v13 = vpack.c.bf16 %v2384_v12, %v2383_v11 }
 0x2de   : > { %v1133_v15 = vld [vmem:[#allocation3 + $0x2] sm:$0xff]  ;;  %2766 = vmatmul.mubr.msk.f32.vlgmr.msra.gmra.mrb[8].mxu0 %vm719_vm3, %v968_v14  ;;  %3185 = vmatpush3.bf16.msra.mxu1 %v3184_v10  ;;  %v3203_v10 = vpack.c.bf16 %v2382_v9, %v2381_v8  ;;  %v1670_v8 = vld [vmem:[#allocation9 + $0xb8] sm:$0xff] }
 0x2df   : > { %1637 = vst [vmem:[#allocation3] sm:$0xff] %v3750_v0  ;;  %1638 = vst [vmem:[#allocation3 + $0x8] sm:$0xff] %v3750_v0  ;;  %2784 = vmatprep.mubr.msk.f32.mxu1 %vm3753_vm1, %v3750_v0  ;;  %3186 = vmatprep.subr.bf16.mxu1 %v3752_v32  ;;  %v2385_v14 = vld [vmem:[%s4510_s7 + $0xc0] sm:$0xff]  ;;  %v1672_v11 = vld [vmem:[#allocation9 + $0xc8] sm:$0xff]  ;;  %vm2245_vm1 = vcmask 392192  }
 0x2e0   : > { %2789 = vmatprep.mubr.msk.f32.mxu0 %vm1249_vm10, %v1247_v29  ;;  %v1349_v29 = vld [vmem:[%s4510_s7 + $0x70] sm:$0xff] }
 0x2e2   : > { %3188 = vmatpush3.bf16.msra.mxu1 %v3187_v16 }
 0x2e3   : > { %3189 = vmatprep.subr.bf16.mxu1 %v3752_v32 }
 0x2e6   : > { %3191 = vmatpush3.bf16.msra.mxu1 %v3190_v19  ;;  %v3215_v19 = vpack.c.bf16 %v2388_v18, %v2387_v17  ;;  %v1676_v17 = vld [vmem:[#allocation9 + $0xe8] sm:$0xff] }
 0x2e7   : > { %3192 = vmatprep.subr.bf16.mxu1 %v3752_v32  ;;  %v1335_v32 = vld [vmem:[%s4510_s7] sm:$0xff] }
 0x2e8   : > { %v3227_v33 = vpack.c.bf16 %v1336_v31, %v1335_v32  ;;  %v3255_v32 = vpack.c.bf16 %v1350_v30, %v1349_v29  ;;  %v2393_v31 = vld [vmem:[%s4510_s7 + $0x100] sm:$0xff] }
 0x2ea   : > { %3194 = vmatpush3.bf16.msra.mxu1 %v3193_v22  ;;  %v3219_v22 = vpack.c.bf16 %v2390_v21, %v2389_v20  ;;  %v1678_v20 = vld [vmem:[#allocation9 + $0xf8] sm:$0xff] }
 0x2eb   : > { %3228 = vmatprep.subr.bf16.mxu1 %v3227_v33 }
 0x2ed   : > { %2785 = vmatmul.mubr.msk.f32.vlgmr.msra.gmra.mrb[4].mxu1 %vm719_vm3, %v1133_v15  ;;  %v2386_v15 = vld [vmem:[%s4510_s7 + $0xc8] sm:$0xff] }
 0x2ee   : > { %3230 = vmatpush3.bf16.msra.mxu1 %v3227_v33  ;;  %v3211_v16 = vpack.c.bf16 %v2386_v15, %v2385_v14  ;;  %v2394_v33 = vld [vmem:[%s4510_s7 + $0x108] sm:$0xff] }
 0x2ef   : > { %3232 = vmatprep.subr.bf16.mxu1 %v3231_v36  ;;  %v3259_v34 = vpack.c.bf16 %v2394_v33, %v2393_v31  ;;  %v1674_v14 = vld [vmem:[#allocation9 + $0xd8] sm:$0xff] }
 0x2f2   : > { %3234 = vmatpush3.bf16.msra.mxu1 %v3231_v36 }
 0x2f3   : > { %3236 = vmatprep.subr.bf16.mxu1 %v3235_v39 }
 0x2f6   : > { %3238 = vmatpush3.bf16.msra.mxu1 %v3235_v39 }
 0x2f7   : > { %3240 = vmatprep.subr.bf16.mxu1 %v3239_v42 }
 0x2fa   : > { %3242 = vmatpush3.bf16.msra.mxu1 %v3239_v42 }
 0x2fb   : > { %3244 = vmatprep.subr.bf16.mxu1 %v3243_v45 }
 0x2fe   : > { %3246 = vmatpush3.bf16.msra.mxu1 %v3243_v45  ;;  %v2398_v45 = vld [vmem:[%s4510_s7 + $0x128] sm:$0xff] }
 0x2ff   : > { %3248 = vmatprep.subr.bf16.mxu1 %v3247_v48  ;;  %v3267_v46 = vpack.c.bf16 %v2398_v45, %v2397_v44  ;;  %v1646_v44 = vld [vmem:[#allocation9 + $0x10] sm:$0xff]  ;;  %v1647_v45 = vld [vmem:[#allocation9 + $0x18] sm:$0xff] }
 0x302   : > { %3250 = vmatpush3.bf16.msra.mxu1 %v3247_v48  ;;  %v2400_v48 = vld [vmem:[%s4510_s7 + $0x138] sm:$0xff] }
 0x303   : > { %3252 = vmatprep.subr.bf16.mxu1 %v3251_v28 }
 0x306   : > { %3254 = vmatpush3.bf16.msra.mxu1 %v3251_v28  ;;  %v2416_v28 = vld [vmem:[%s4514_s11 + $0x88] sm:$0xff] }
 0x307   : > { %3256 = vmatprep.subr.bf16.mxu1 %v3255_v32  ;;  %v3387_v29 = vpack.c.bf16 %v2416_v28, %v2415_v27  ;;  %v1846_v28 = vld [vmem:[#allocation9 + $0x170] sm:$0xff] }
 0x30a   : > { %3258 = vmatpush3.bf16.msra.mxu1 %v3255_v32  ;;  %v2409_v32 = vld [vmem:[%s4511_s8] ss:$0 sm:$0xff] }
 0x30b   : > { %3260 = vmatprep.subr.bf16.mxu1 %v3259_v34 }
 0x3b0   : > { %v1056_v49 = vpop.f32.mrb[2].mxu1 }
 0x3b1   : > { %v1129_v50 = vpop.f32.mrb[8].mxu0  ;;  %v2748_v52 = vpop.f32.mrb[3].mxu1 }
 0x3b2   : > { %v1130_v51 = vadd.f32 %v1129_v50, %v1056_v49  ;;  %v2767_v53 = vpop.f32.mrb[9].mxu0  ;;  %v3271_v49 = vpack.c.bf16 %v2400_v48, %v2399_v47  ;;  %v2402_v50 = vld [vmem:[%s4510_s7 + $0x148] sm:$0xff]  ;;  %v2403_v52 = vld [vmem:[%s4510_s7 + $0x150] sm:$0xff] }
 0x3b3   : > { %v2404_v53 = vld [vmem:[%s4510_s7 + $0x158] sm:$0xff] }
 0x3c0   : > { %v1212_v54 = vpop.f32.mrb[4].mxu1 }
 0x3c1   : > { %v1216_v56 = vadd.f32 %v1212_v54, %v1130_v51  ;;  %v2786_v57 = vpop.f32.mrb[5].mxu1  ;;  %v3279_v54 = vpack.c.bf16 %v2404_v53, %v2403_v52  ;;  %v1650_v52 = vld [vmem:[#allocation9 + $0x30] sm:$0xff]  ;;  %v1651_v53 = vld [vmem:[#allocation9 + $0x38] sm:$0xff] }
 0x3c3   : > { %v1224_v58 = vadd.f32 %v2373_v55, %v1216_v56  ;;  %v2405_v55 = vld [vmem:[%s4510_s7 + $0x160] sm:$0xff]  ;;  %v2406_v56 = vld [vmem:[%s4510_s7 + $0x168] sm:$0xff] }
 0x3c4   : > { %v3283_v57 = vpack.c.bf16 %v2406_v56, %v2405_v55  ;;  %v3335_v55 = vpack.c.bf16 %v1651_v53, %v1650_v52  ;;  %v1652_v56 = vld [vmem:[#allocation9 + $0x40] sm:$0xff]  ;;  %v1953_v52 = vld [vmem:[%s4514_s11] sm:$0xff]  ;;  %v1954_v53 = vld [vmem:[%s4514_s11 + $0x8] sm:$0xff] }
 0x3c5   : > { %v1226_v59 = vmin.f32 %v1224_v58, 0.0  ;;  %vm1225_vm12 = vcmp.gt.f32.partialorder %v1224_v58, 0.0 }
 0x3c7   : > { %v1227_v60 = vmul.f32 1.442695, %v1226_v59  ;;  %v2408_v59 = vld [vmem:[%s4510_s7 + $0x178] sm:$0xff] }
 0x3c9   : > { %3575 = vpow2.f32 %v1227_v60 }
 0x3d3   : > { %v3576_v63 = vpop.eup %3575 }
 0x3d4   : > { %v2374_v1 = vadd.f32 -1.0, %v3576_v63  ;;  %v3291_v63 = vpack.c.bf16 %v1664_v62, %v1663_v61  ;;  %v1656_v62 = vld [vmem:[#allocation9 + $0x60] sm:$0xff] }
 0x3d6   : > { %v1230_v5 = vsel %vm1225_vm12, %v1224_v58, %v2374_v1  ;;  %v2407_v58 = vld [vmem:[%s4510_s7 + $0x170] sm:$0xff]  ;;  %v1665_v1 = vld [vmem:[#allocation9 + $0x90] sm:$0xff] }
 0x3d7   : > { %2787 = vmatprep.subr.mxu0 %v1230_v5  ;;  %v3287_v60 = vpack.c.bf16 %v2408_v59, %v2407_v58  ;;  %v3295_v3 = vpack.c.bf16 %v1666_v2, %v1665_v1  ;;  %v1654_v59 = vld [vmem:[#allocation9 + $0x50] sm:$0xff] }
 0x3d8   : > { %2788 = vmatpush3.msra.mxu0 %v1230_v5  ;;  %v1668_v5 = vld [vmem:[#allocation9 + $0xa8] sm:$0xff]  ;;  %v1658_v2 = vld [vmem:[#allocation9 + $0x70] sm:$0xff] }
 0x3d9   : > { %2790 = vmatmul.mubr.msk.f32.vlgmr.msra.gmra.mrb[10].mxu0 %vm1249_vm10, %v1248_v6  ;;  %3196 = vmatprep.subr.bf16.mxu0 %v3195_v4 }
 0x3da   : > { %3198 = vmatpush3.bf16.msra.mxu0 %v3195_v4  ;;  %v1667_v4 = vld [vmem:[#allocation9 + $0xa0] sm:$0xff] }
 0x3db   : > { %3200 = vmatprep.subr.bf16.mxu0 %v3199_v7  ;;  %v3299_v6 = vpack.c.bf16 %v1668_v5, %v1667_v4  ;;  %v1832_v5 = vld [vmem:[#allocation9 + $0x100] sm:$0xff] }
 0x3de   : > { %3202 = vmatpush3.bf16.msra.mxu0 %v3199_v7  ;;  %v1669_v7 = vld [vmem:[#allocation9 + $0xb0] sm:$0xff] }
 0x3df   : > { %3204 = vmatprep.subr.bf16.mxu0 %v3203_v10  ;;  %v3303_v9 = vpack.c.bf16 %v1670_v8, %v1669_v7  ;;  %v1834_v8 = vld [vmem:[#allocation9 + $0x110] sm:$0xff] }
 0x3e2   : > { %3206 = vmatpush3.bf16.msra.mxu0 %v3203_v10  ;;  %v1671_v10 = vld [vmem:[#allocation9 + $0xc0] sm:$0xff] }
 0x3e3   : > { %3208 = vmatprep.subr.bf16.mxu0 %v3207_v13  ;;  %v3307_v12 = vpack.c.bf16 %v1672_v11, %v1671_v10 }
 0x3e6   : > { %3210 = vmatpush3.bf16.msra.mxu0 %v3207_v13  ;;  %v1673_v13 = vld [vmem:[#allocation9 + $0xd0] sm:$0xff] }
 0x3e7   : > { %3212 = vmatprep.subr.bf16.mxu0 %v3211_v16  ;;  %v3311_v15 = vpack.c.bf16 %v1674_v14, %v1673_v13  ;;  %v1837_v13 = vld [vmem:[#allocation9 + $0x128] sm:$0xff] }
 0x3ea   : > { %3214 = vmatpush3.bf16.msra.mxu0 %v3211_v16  ;;  %v1675_v16 = vld [vmem:[#allocation9 + $0xe0] sm:$0xff] }
 0x3eb   : > { %3216 = vmatprep.subr.bf16.mxu0 %v3215_v19  ;;  %v3315_v18 = vpack.c.bf16 %v1676_v17, %v1675_v16  ;;  %v1838_v16 = vld [vmem:[#allocation9 + $0x130] sm:$0xff]  ;;  %v1839_v17 = vld [vmem:[#allocation9 + $0x138] sm:$0xff] }
 0x3ee   : > { %3218 = vmatpush3.bf16.msra.mxu0 %v3215_v19  ;;  %v1677_v19 = vld [vmem:[#allocation9 + $0xf0] sm:$0xff] }
 0x3ef   : > { %3220 = vmatprep.subr.bf16.mxu0 %v3219_v22  ;;  %v3319_v21 = vpack.c.bf16 %v1678_v20, %v1677_v19  ;;  %v1840_v19 = vld [vmem:[#allocation9 + $0x140] sm:$0xff]  ;;  %v1841_v20 = vld [vmem:[#allocation9 + $0x148] sm:$0xff] }
 0x3f2   : > { %3222 = vmatpush3.bf16.msra.mxu0 %v3219_v22  ;;  %v1644_v22 = vld [vmem:[#allocation9] sm:$0xff] }
 0x3f3   : > { %3224 = vmatprep.subr.bf16.mxu0 %v3223_v25  ;;  %v3323_v24 = vpack.c.bf16 %v1645_v23, %v1644_v22  ;;  %v1842_v22 = vld [vmem:[#allocation9 + $0x150] sm:$0xff]  ;;  %v1843_v23 = vld [vmem:[#allocation9 + $0x158] sm:$0xff] }
 0x3f6   : > { %3226 = vmatpush3.bf16.msra.mxu0 %v3223_v25 }
 0x3f7   : > { %3292 = vmatprep.subr.bf16.mxu0 %v3291_v63 }
 0x4ac   : > { %v2791_v35 = vpop.f32.mrb[10].mxu0 }
 0x4ad   : > { %1332 = vst [vmem:[#allocation2 + $0x9] sm:$0xff] %v2791_v35  ;;  %v1322_v36 = vpop.f32.mrb[11].mxu0 }
 0x4ae   : > { %1331 = vst [vmem:[#allocation2 + $0x1] sm:$0xff] %v1322_v36  ;;  %2824 = vmatprep.mubr.f32.mxu0 %v1322_v36 }
 0x4af   : > { %2825 = vmatmul.mubr.f32.vlgmr.msra.gmra.mrb[12].mxu0 %v2791_v35 }
 0x4b0   : > { %3294 = vmatpush3.bf16.msra.mxu0 %v3291_v63  ;;  %v1657_v63 = vld [vmem:[#allocation9 + $0x68] sm:$0xff] }
 0x4b1   : > { %3296 = vmatprep.subr.bf16.mxu0 %v3295_v3  ;;  %v3347_v1 = vpack.c.bf16 %v1657_v63, %v1656_v62 }
 0x4b4   : > { %v1521_v39 = vld [vmem:[#allocation2 + $0xa] sm:$0xff]  ;;  %3298 = vmatpush3.bf16.msra.mxu0 %v3295_v3 }
 0x4b5   : > { %v1333_v40 = vld [vmem:[#allocation2] sm:$0xff]  ;;  %v1334_v41 = vld [vmem:[#allocation2 + $0x8] sm:$0xff]  ;;  %1948 = vst [vmem:[#allocation2 + $0x10] sm:$0x3] %v3750_v0  ;;  %3300 = vmatprep.subr.bf16.mxu0 %v3299_v6 }
 0x4b6   : > { %v1520_v42 = vld [vmem:[#allocation2 + $0x2] sm:$0xff]  ;;  %2859 = vmatprep.mubr.f32.mxu1 %v1333_v40 }
 0x4b7   : > { %1946 = vst [vmem:[#allocation2] sm:$0xff] %v3750_v0  ;;  %1947 = vst [vmem:[#allocation2 + $0x8] sm:$0xff] %v3750_v0  ;;  %2860 = vmatmul.mubr.f32.vlgmr.msra.gmra.mrb[6].mxu1 %v1334_v41  ;;  %v2401_v0 = vld [vmem:[%s4510_s7 + $0x140] sm:$0xff]  ;;  %v1659_v3 = vld [vmem:[#allocation9 + $0x78] sm:$0xff] }
 0x4b8   : > { %3262 = vmatpush3.bf16.msra.mxu1 %v3259_v34  ;;  %2894 = vmatprep.mubr.f32.mxu1 %v1520_v42  ;;  %v3275_v51 = vpack.c.bf16 %v2402_v50, %v2401_v0  ;;  %v1648_v0 = vld [vmem:[#allocation9 + $0x20] sm:$0xff]  ;;  %v1649_v50 = vld [vmem:[#allocation9 + $0x28] sm:$0xff]  ;;  %v3351_v4 = vpack.c.bf16 %v1659_v3, %v1658_v2 }
 0x4b9   : > { %3264 = vmatprep.subr.bf16.mxu1 %v3263_v43  ;;  %3302 = vmatpush3.bf16.msra.mxu0 %v3299_v6  ;;  %v1833_v6 = vld [vmem:[#allocation9 + $0x108] sm:$0xff] }
 0x4ba   : > { %3304 = vmatprep.subr.bf16.mxu0 %v3303_v9  ;;  %v3355_v7 = vpack.c.bf16 %v1833_v6, %v1832_v5  ;;  %v1956_v5 = vld [vmem:[%s4514_s11 + $0x18] sm:$0xff] }
 0x4bc   : > { %3266 = vmatpush3.bf16.msra.mxu1 %v3263_v43 }
 0x4bd   : > { %3268 = vmatprep.subr.bf16.mxu1 %v3267_v46  ;;  %3306 = vmatpush3.bf16.msra.mxu0 %v3303_v9  ;;  %v1835_v9 = vld [vmem:[#allocation9 + $0x118] sm:$0xff] }
 0x4be   : > { %3308 = vmatprep.subr.bf16.mxu0 %v3307_v12  ;;  %v3359_v10 = vpack.c.bf16 %v1835_v9, %v1834_v8 }
 0x4c0   : > { %3270 = vmatpush3.bf16.msra.mxu1 %v3267_v46 }
 0x4c1   : > { %3272 = vmatprep.subr.bf16.mxu1 %v3271_v49  ;;  %3310 = vmatpush3.bf16.msra.mxu0 %v3307_v12  ;;  %v1836_v12 = vld [vmem:[#allocation9 + $0x120] sm:$0xff] }
 0x4c2   : > { %3312 = vmatprep.subr.bf16.mxu0 %v3311_v15 }
 0x4c4   : > { %3274 = vmatpush3.bf16.msra.mxu1 %v3271_v49  ;;  %v3327_v49 = vpack.c.bf16 %v1647_v45, %v1646_v44  ;;  %v2425_v44 = vld [vmem:[%s4514_s11 + $0xd0] sm:$0xff]  ;;  %v2426_v45 = vld [vmem:[%s4514_s11 + $0xd8] sm:$0xff] }
 0x4c5   : > { %3276 = vmatprep.subr.bf16.mxu1 %v3275_v51  ;;  %3314 = vmatpush3.bf16.msra.mxu0 %v3311_v15  ;;  %v3363_v15 = vpack.c.bf16 %v1837_v13, %v1836_v12  ;;  %v1959_v13 = vld [vmem:[%s4514_s11 + $0x30] sm:$0xff] }
 0x4c6   : > { %3316 = vmatprep.subr.bf16.mxu0 %v3315_v18 }
 0x4c8   : > { %3278 = vmatpush3.bf16.msra.mxu1 %v3275_v51  ;;  %v3331_v51 = vpack.c.bf16 %v1649_v50, %v1648_v0  ;;  %v2429_v0 = vld [vmem:[%s4514_s11 + $0xf0] sm:$0xff]  ;;  %v2430_v50 = vld [vmem:[%s4514_s11 + $0xf8] sm:$0xff] }
 0x4c9   : > { %3280 = vmatprep.subr.bf16.mxu1 %v3279_v54  ;;  %3318 = vmatpush3.bf16.msra.mxu0 %v3315_v18  ;;  %v3367_v18 = vpack.c.bf16 %v1839_v17, %v1838_v16  ;;  %v1961_v17 = vld [vmem:[%s4514_s11 + $0x40] sm:$0xff] }
 0x4ca   : > { %3320 = vmatprep.subr.bf16.mxu0 %v3319_v21 }
 0x4cc   : > { %3282 = vmatpush3.bf16.msra.mxu1 %v3279_v54 }
 0x4cd   : > { %3284 = vmatprep.subr.bf16.mxu1 %v3283_v57  ;;  %3322 = vmatpush3.bf16.msra.mxu0 %v3319_v21  ;;  %v3371_v21 = vpack.c.bf16 %v1841_v20, %v1840_v19  ;;  %v1963_v20 = vld [vmem:[%s4514_s11 + $0x50] sm:$0xff] }
 0x4ce   : > { %3324 = vmatprep.subr.bf16.mxu0 %v3323_v24 }
 0x4d0   : > { %3286 = vmatpush3.bf16.msra.mxu1 %v3283_v57  ;;  %v1653_v57 = vld [vmem:[#allocation9 + $0x48] sm:$0xff] }
 0x4d1   : > { %3288 = vmatprep.subr.bf16.mxu1 %v3287_v60  ;;  %v3339_v58 = vpack.c.bf16 %v1653_v57, %v1652_v56 }
 0x4d4   : > { %3290 = vmatpush3.bf16.msra.mxu1 %v3287_v60  ;;  %v1655_v60 = vld [vmem:[#allocation9 + $0x58] sm:$0xff] }
 0x4d5   : > { %3388 = vmatprep.subr.bf16.mxu1 %v3387_v29  ;;  %v3343_v61 = vpack.c.bf16 %v1655_v60, %v1654_v59 }
 0x4d7   : > { %2895 = vmatmul.mubr.f32.vlgmr.msra.gmra.mrb[6].mxu1 %v1521_v39 }
 0x4d8   : > { %3390 = vmatpush3.bf16.msra.mxu1 %v3387_v29  ;;  %v1847_v29 = vld [vmem:[#allocation9 + $0x178] sm:$0xff] }
 0x582   : > { %v2826_v25 = vpop.f32.mrb[12].mxu0 }
 0x583   : > { %v1436_v26 = vpop.f32.mrb[13].mxu0 }
 0x5aa   : > { %v2896_v30 = vpop.f32.mrb[6].mxu1 }
 0x5ab   : > { %v3483_v31 = vadd.f32 %v2896_v30, %v2826_v25  ;;  %v1605_v33 = vpop.f32.mrb[7].mxu1  ;;  %v1844_v25 = vld [vmem:[#allocation9 + $0x160] sm:$0xff]  ;;  %v3383_v30 = vpack.c.bf16 %v1847_v29, %v1846_v28  ;;  %v2431_v29 = vld [vmem:[%s4514_s11 + $0x100] sm:$0xff] }
 0x5ac   : > { %v3484_v34 = vadd.f32 %v1605_v33, %v1436_v26  ;;  %v1845_v26 = vld [vmem:[#allocation9 + $0x168] sm:$0xff] }
 0x5ad   : > { %v1624_v35 = vadd.f32 %v3483_v31, %v2409_v32  ;;  %v3379_v27 = vpack.c.bf16 %v1845_v26, %v1844_v25  ;;  %v2417_v31 = vld [vmem:[%s4514_s11 + $0x90] sm:$0xff]  ;;  %v2418_v33 = vld [vmem:[%s4514_s11 + $0x98] sm:$0xff] }
 0x5ae   : > { %v1623_v36 = vadd.f32 %v3484_v34, %v2409_v32  ;;  %v3391_v34 = vpack.c.bf16 %v2418_v33, %v2417_v31  ;;  %v1967_v26 = vld [vmem:[%s4514_s11 + $0x70] sm:$0xff]  ;;  %v2434_v33 = vld [vmem:[%s4514_s11 + $0x118] sm:$0xff] }
 0x5af   : > { %v1628_v37 = vmin.f32 %v1624_v35, 0.0  ;;  %vm1626_vm13 = vcmp.gt.f32.partialorder %v1624_v35, 0.0  ;;  %v2433_v31 = vld [vmem:[%s4514_s11 + $0x110] sm:$0xff] }
 0x5b0   : > { %v1627_v38 = vmin.f32 %v1623_v36, 0.0  ;;  %vm1625_vm14 = vcmp.gt.f32.partialorder %v1623_v36, 0.0  ;;  %3392 = vmatprep.subr.bf16.mxu1 %v3391_v34 }
 0x5b1   : > { %v1631_v39 = vmul.f32 1.442695, %v1628_v37  ;;  %3394 = vmatpush3.bf16.msra.mxu1 %v3391_v34  ;;  %v3455_v34 = vpack.c.bf16 %v2434_v33, %v2433_v31 }
 0x5b2   : > { %v1629_v40 = vmul.f32 1.442695, %v1627_v38  ;;  %v2421_v38 = vld [vmem:[%s4514_s11 + $0xb0] sm:$0xff] }
 0x5b3   : > { %3577 = vpow2.f32 %v1631_v39  ;;  %v2422_v39 = vld [vmem:[%s4514_s11 + $0xb8] sm:$0xff] }
 0x5b4   : > { %3579 = vpow2.f32 %v1629_v40  ;;  %v3399_v40 = vpack.c.bf16 %v2422_v39, %v2421_v38 }
 0x5bd   : > { %v3578_v41 = vpop.eup %3577 }
 0x5be   : > { %v3580_v42 = vpop.eup %3579  ;;  %v2411_v43 = vadd.f32 -1.0, %v3578_v41  ;;  %v2423_v41 = vld [vmem:[%s4514_s11 + $0xc0] sm:$0xff] }
 0x5bf   : > { %v2410_v46 = vadd.f32 -1.0, %v3580_v42  ;;  %v2424_v42 = vld [vmem:[%s4514_s11 + $0xc8] sm:$0xff] }
 0x5c0   : > { %v1636_v47 = vsel %vm1626_vm13, %v1624_v35, %v2411_v43  ;;  %v2419_v35 = vld [vmem:[%s4514_s11 + $0xa0] sm:$0xff]  ;;  %v3403_v43 = vpack.c.bf16 %v2424_v42, %v2423_v41  ;;  %v2438_v41 = vld [vmem:[%s4514_s11 + $0x138] sm:$0xff] }
 0x5c1   : > { %1641 = vst [vmem:[#allocation3 + $0x9] sm:$0xff] %v1636_v47  ;;  %v1635_v48 = vsel %vm1625_vm14, %v1623_v36, %v2410_v46  ;;  %v2420_v36 = vld [vmem:[%s4514_s11 + $0xa8] sm:$0xff]  ;;  %v3407_v46 = vpack.c.bf16 %v2426_v45, %v2425_v44 }
 0x5c2   : > { %1640 = vst [vmem:[#allocation3 + $0x1] sm:$0xff] %v1635_v48  ;;  %2929 = vmatprep.mubr.f32.mxu0 %v1635_v48  ;;  %v3395_v37 = vpack.c.bf16 %v2420_v36, %v2419_v35  ;;  %v2428_v48 = vld [vmem:[%s4514_s11 + $0xe8] sm:$0xff]  ;;  %v2435_v36 = vld [vmem:[%s4514_s11 + $0x120] sm:$0xff] }
 0x5c3   : > { %2930 = vmatmul.mubr.f32.vlgmr.msra.gmra.mrb[14].mxu0 %v1636_v47  ;;  %v2427_v47 = vld [vmem:[%s4514_s11 + $0xe0] sm:$0xff]  ;;  %v2440_v44 = vld [vmem:[%s4514_s11 + $0x148] sm:$0xff] }
 0x5c4   : > { %3326 = vmatpush3.bf16.msra.mxu0 %v3323_v24  ;;  %v3375_v24 = vpack.c.bf16 %v1843_v23, %v1842_v22  ;;  %3396 = vmatprep.subr.bf16.mxu1 %v3395_v37  ;;  %v1965_v23 = vld [vmem:[%s4514_s11 + $0x60] sm:$0xff] }
 0x5c5   : > { %3328 = vmatprep.subr.bf16.mxu0 %v3327_v49  ;;  %3398 = vmatpush3.bf16.msra.mxu1 %v3395_v37  ;;  %v2436_v37 = vld [vmem:[%s4514_s11 + $0x128] sm:$0xff] }
 0x5c6   : > { %3400 = vmatprep.subr.bf16.mxu1 %v3399_v40  ;;  %v3459_v39 = vpack.c.bf16 %v2436_v37, %v2435_v36 }
 0x5c8   : > { %3330 = vmatpush3.bf16.msra.mxu0 %v3327_v49  ;;  %v1830_v32 = vld [vmem:[#allocation3 + $0xa] sm:$0xff]  ;;  %v3411_v49 = vpack.c.bf16 %v2428_v48, %v2427_v47  ;;  %v2442_v47 = vld [vmem:[%s4514_s11 + $0x158] sm:$0xff] }
 0x5c9   : > { %v1642_v54 = vld [vmem:[#allocation3] sm:$0xff]  ;;  %3332 = vmatprep.subr.bf16.mxu0 %v3331_v51  ;;  %v1643_v11 = vld [vmem:[#allocation3 + $0x8] sm:$0xff]  ;;  %3402 = vmatpush3.bf16.msra.mxu1 %v3399_v40  ;;  %v2437_v40 = vld [vmem:[%s4514_s11 + $0x130] sm:$0xff] }
 0x5ca   : > { %2964 = vmatprep.mubr.f32.mxu0 %v1642_v54  ;;  %v1829_v14 = vld [vmem:[#allocation3 + $0x2] sm:$0xff]  ;;  %3404 = vmatprep.subr.bf16.mxu1 %v3403_v43  ;;  %v3419_v54 = vpack.c.bf16 %v1954_v53, %v1953_v52  ;;  %v3463_v42 = vpack.c.bf16 %v2438_v41, %v2437_v40 }
 0x5cb   : > { %v2446_v52 = vld [vmem:[%s4514_s11 + $0x178] sm:$0xff] }
 0x5cc   : > { %3334 = vmatpush3.bf16.msra.mxu0 %v3331_v51  ;;  %v3415_v51 = vpack.c.bf16 %v2430_v50, %v2429_v0  ;;  %v2444_v0 = vld [vmem:[%s4514_s11 + $0x168] sm:$0xff] }
 0x5cd   : > { %3336 = vmatprep.subr.bf16.mxu0 %v3335_v55  ;;  %3406 = vmatpush3.bf16.msra.mxu1 %v3403_v43  ;;  %v2439_v43 = vld [vmem:[%s4514_s11 + $0x140] sm:$0xff] }
 0x5ce   : > { %3408 = vmatprep.subr.bf16.mxu1 %v3407_v46  ;;  %v3467_v45 = vpack.c.bf16 %v2440_v44, %v2439_v43 }
 0x5d0   : > { %3338 = vmatpush3.bf16.msra.mxu0 %v3335_v55  ;;  %v2412_v55 = vld [vmem:[%s4513_s10] ss:$0 sm:$0xff] }
 0x5d1   : > { %3340 = vmatprep.subr.bf16.mxu0 %v3339_v58  ;;  %3410 = vmatpush3.bf16.msra.mxu1 %v3407_v46  ;;  %v2441_v46 = vld [vmem:[%s4514_s11 + $0x150] sm:$0xff] }
 0x5d2   : > { %3412 = vmatprep.subr.bf16.mxu1 %v3411_v49  ;;  %v3471_v48 = vpack.c.bf16 %v2442_v47, %v2441_v46 }
 0x5d4   : > { %3342 = vmatpush3.bf16.msra.mxu0 %v3339_v58 }
 0x5d5   : > { %3344 = vmatprep.subr.bf16.mxu0 %v3343_v61  ;;  %3414 = vmatpush3.bf16.msra.mxu1 %v3411_v49  ;;  %v2443_v49 = vld [vmem:[%s4514_s11 + $0x160] sm:$0xff] }
 0x5d6   : > { %3416 = vmatprep.subr.bf16.mxu1 %v3415_v51  ;;  %v3475_v50 = vpack.c.bf16 %v2444_v0, %v2443_v49 }
 0x5d8   : > { %3346 = vmatpush3.bf16.msra.mxu0 %v3343_v61 }
 0x5d9   : > { %3348 = vmatprep.subr.bf16.mxu0 %v3347_v1  ;;  %3418 = vmatpush3.bf16.msra.mxu1 %v3415_v51  ;;  %v2445_v51 = vld [vmem:[%s4514_s11 + $0x170] sm:$0xff] }
 0x5da   : > { %3420 = vmatprep.subr.bf16.mxu1 %v3419_v54  ;;  %v3479_v53 = vpack.c.bf16 %v2446_v52, %v2445_v51 }
 0x5dc   : > { %3350 = vmatpush3.bf16.msra.mxu0 %v3347_v1 }
 0x5dd   : > { %3352 = vmatprep.subr.bf16.mxu0 %v3351_v4 }
 0x5e0   : > { %3354 = vmatpush3.bf16.msra.mxu0 %v3351_v4  ;;  %v1955_v4 = vld [vmem:[%s4514_s11 + $0x10] sm:$0xff] }
 0x5e1   : > { %3356 = vmatprep.subr.bf16.mxu0 %v3355_v7  ;;  %v3423_v9 = vpack.c.bf16 %v1956_v5, %v1955_v4 }
 0x5e3   : > { %2965 = vmatmul.mubr.f32.vlgmr.msra.gmra.mrb[14].mxu0 %v1643_v11  ;;  %v1958_v11 = vld [vmem:[%s4514_s11 + $0x28] sm:$0xff] }
 0x5e4   : > { %3358 = vmatpush3.bf16.msra.mxu0 %v3355_v7  ;;  %2999 = vmatprep.mubr.f32.mxu0 %v1829_v14  ;;  %v1960_v14 = vld [vmem:[%s4514_s11 + $0x38] sm:$0xff] }
 0x5e5   : > { %3360 = vmatprep.subr.bf16.mxu0 %v3359_v10  ;;  %v3431_v16 = vpack.c.bf16 %v1960_v14, %v1959_v13 }
 0x5e8   : > { %3362 = vmatpush3.bf16.msra.mxu0 %v3359_v10  ;;  %v1957_v10 = vld [vmem:[%s4514_s11 + $0x20] sm:$0xff] }
 0x5e9   : > { %3364 = vmatprep.subr.bf16.mxu0 %v3363_v15  ;;  %v3427_v12 = vpack.c.bf16 %v1958_v11, %v1957_v10 }
 0x5ec   : > { %3366 = vmatpush3.bf16.msra.mxu0 %v3363_v15 }
 0x5ed   : > { %3368 = vmatprep.subr.bf16.mxu0 %v3367_v18 }
 0x5f0   : > { %3370 = vmatpush3.bf16.msra.mxu0 %v3367_v18  ;;  %v1962_v18 = vld [vmem:[%s4514_s11 + $0x48] sm:$0xff] }
 0x5f1   : > { %3372 = vmatprep.subr.bf16.mxu0 %v3371_v21  ;;  %v3435_v19 = vpack.c.bf16 %v1962_v18, %v1961_v17 }
 0x5f4   : > { %3374 = vmatpush3.bf16.msra.mxu0 %v3371_v21  ;;  %v1964_v21 = vld [vmem:[%s4514_s11 + $0x58] sm:$0xff] }
 0x5f5   : > { %3376 = vmatprep.subr.bf16.mxu0 %v3375_v24  ;;  %v3439_v22 = vpack.c.bf16 %v1964_v21, %v1963_v20 }
 0x5f8   : > { %3378 = vmatpush3.bf16.msra.mxu0 %v3375_v24  ;;  %v1966_v24 = vld [vmem:[%s4514_s11 + $0x68] sm:$0xff] }
 0x5f9   : > { %3380 = vmatprep.subr.bf16.mxu0 %v3379_v27  ;;  %v3443_v25 = vpack.c.bf16 %v1966_v24, %v1965_v23 }
 0x5fc   : > { %3382 = vmatpush3.bf16.msra.mxu0 %v3379_v27  ;;  %v1968_v27 = vld [vmem:[%s4514_s11 + $0x78] sm:$0xff] }
 0x5fd   : > { %3384 = vmatprep.subr.bf16.mxu0 %v3383_v30  ;;  %v3447_v28 = vpack.c.bf16 %v1968_v27, %v1967_v26 }
 0x600   : > { %3386 = vmatpush3.bf16.msra.mxu0 %v3383_v30  ;;  %v2432_v30 = vld [vmem:[%s4514_s11 + $0x108] sm:$0xff] }
 0x603   : > { %3000 = vmatmul.mubr.f32.vlgmr.msra.gmra.mrb[14].mxu0 %v1830_v32  ;;  %v3451_v32 = vpack.c.bf16 %v2432_v30, %v2431_v29 }
 0x6d6   : > { %v3001_v56 = vpop.f32.mrb[14].mxu0 }
 0x6d7   : > { %v1933_v57 = vadd.f32 %v3001_v56, %v2412_v55  ;;  %v1914_v58 = vpop.f32.mrb[15].mxu0 }
 0x6d8   : > { %v1932_v59 = vadd.f32 %v2412_v55, %v1914_v58  ;;  %v2447_v55 = vld [vmem:[%s4550_s20] ss:$0 sm:$0xff] }
 0x6d9   : > { %v1937_v60 = vmin.f32 %v1933_v57, 0.0  ;;  %vm1935_vm15 = vcmp.gt.f32.partialorder %v1933_v57, 0.0 }
 0x6da   : > { %v1936_v61 = vmin.f32 %v1932_v59, 0.0  ;;  %vm1934_vm0 = vcmp.gt.f32.partialorder %v1932_v59, 0.0 }
 0x6db   : > { %v1940_v62 = vmul.f32 1.442695, %v1937_v60 }
 0x6dc   : > { %v1938_v63 = vmul.f32 1.442695, %v1936_v61 }
 0x6dd   : > { %3581 = vpow2.f32 %v1940_v62 }
 0x6de   : > { %3583 = vpow2.f32 %v1938_v63 }
 0x6e7   : > { %v3582_v1 = vpop.eup %3581 }
 0x6e8   : > { %v3584_v2 = vpop.eup %3583  ;;  %v2414_v3 = vadd.f32 -1.0, %v3582_v1 }
 0x6e9   : > { %v2413_v6 = vadd.f32 -1.0, %v3584_v2 }
 0x6ea   : > { %v1945_v7 = vsel %vm1935_vm15, %v1933_v57, %v2414_v3 }
 0x6eb   : > { %1950 = vst [vmem:[#allocation2 + $0x9] sm:$0xff] %v1945_v7  ;;  %v1944_v8 = vsel %vm1934_vm0, %v1932_v59, %v2413_v6 }
 0x6ec   : > { %1949 = vst [vmem:[#allocation2 + $0x1] sm:$0xff] %v1944_v8  ;;  %3034 = vmatprep.mubr.f32.mxu1 %v1944_v8 }
 0x6ed   : > { %3035 = vmatmul.mubr.f32.vlgmr.msra.gmra.mrb[8].mxu1 %v1945_v7 }
 0x6ee   : > { %3422 = vmatpush3.bf16.msra.mxu1 %v3419_v54 }
 0x6ef   : > { %3424 = vmatprep.subr.bf16.mxu1 %v3423_v9 }
 0x6f2   : > { %3426 = vmatpush3.bf16.msra.mxu1 %v3423_v9  ;;  %v2139_v54 = vld [vmem:[#allocation2 + $0xa] sm:$0xff] }
 0x6f3   : > { %v1951_v15 = vld [vmem:[#allocation2] sm:$0xff]  ;;  %3428 = vmatprep.subr.bf16.mxu1 %v3427_v12  ;;  %v1952_v35 = vld [vmem:[#allocation2 + $0x8] sm:$0xff] }
 0x6f4   : > { %3069 = vmatprep.mubr.f32.mxu1 %v1951_v15  ;;  %v2138_v38 = vld [vmem:[#allocation2 + $0x2] sm:$0xff] }
 0x6f6   : > { %3430 = vmatpush3.bf16.msra.mxu1 %v3427_v12 }
 0x6f7   : > { %3432 = vmatprep.subr.bf16.mxu1 %v3431_v16 }
 0x6fa   : > { %3434 = vmatpush3.bf16.msra.mxu1 %v3431_v16 }
 0x6fb   : > { %3436 = vmatprep.subr.bf16.mxu1 %v3435_v19 }
 0x6fe   : > { %3438 = vmatpush3.bf16.msra.mxu1 %v3435_v19 }
 0x6ff   : > { %3440 = vmatprep.subr.bf16.mxu1 %v3439_v22 }
 0x702   : > { %3442 = vmatpush3.bf16.msra.mxu1 %v3439_v22 }
 0x703   : > { %3444 = vmatprep.subr.bf16.mxu1 %v3443_v25 }
 0x706   : > { %3446 = vmatpush3.bf16.msra.mxu1 %v3443_v25 }
 0x707   : > { %3448 = vmatprep.subr.bf16.mxu1 %v3447_v28 }
 0x70a   : > { %3450 = vmatpush3.bf16.msra.mxu1 %v3447_v28 }
 0x70b   : > { %3452 = vmatprep.subr.bf16.mxu1 %v3451_v32 }
 0x70d   : > { %3070 = vmatmul.mubr.f32.vlgmr.msra.gmra.mrb[8].mxu1 %v1952_v35 }
 0x70e   : > { %3454 = vmatpush3.bf16.msra.mxu1 %v3451_v32  ;;  %3104 = vmatprep.mubr.f32.mxu1 %v2138_v38 }
 0x70f   : > { %3456 = vmatprep.subr.bf16.mxu1 %v3455_v34 }
 0x712   : > { %3458 = vmatpush3.bf16.msra.mxu1 %v3455_v34 }
 0x713   : > { %3460 = vmatprep.subr.bf16.mxu1 %v3459_v39 }
 0x716   : > { %3462 = vmatpush3.bf16.msra.mxu1 %v3459_v39 }
 0x717   : > { %3464 = vmatprep.subr.bf16.mxu1 %v3463_v42 }
 0x71a   : > { %3466 = vmatpush3.bf16.msra.mxu1 %v3463_v42 }
 0x71b   : > { %3468 = vmatprep.subr.bf16.mxu1 %v3467_v45 }
 0x71e   : > { %3470 = vmatpush3.bf16.msra.mxu1 %v3467_v45 }
 0x71f   : > { %3472 = vmatprep.subr.bf16.mxu1 %v3471_v48 }
 0x722   : > { %3474 = vmatpush3.bf16.msra.mxu1 %v3471_v48 }
 0x723   : > { %3476 = vmatprep.subr.bf16.mxu1 %v3475_v50 }
 0x726   : > { %3478 = vmatpush3.bf16.msra.mxu1 %v3475_v50 }
 0x727   : > { %3480 = vmatprep.subr.bf16.mxu1 %v3479_v53 }
 0x72a   : > { %3482 = vmatpush3.bf16.msra.mxu1 %v3479_v53 }
 0x72d   : > { %3105 = vmatmul.mubr.f32.vlgmr.msra.gmra.mrb[8].mxu1 %v2139_v54 }
 0x800   : > { %v3106_v56 = vpop.f32.mrb[8].mxu1 }
 0x801   : > { %v2242_v57 = vadd.f32 %v3106_v56, %v2447_v55  ;;  %v2223_v58 = vpop.f32.mrb[9].mxu1 }
 0x802   : > { %v2241_v59 = vadd.f32 %v2447_v55, %v2223_v58 }
 0x803   : > { %3585 = vtanh.f32 %v2242_v57 }
 0x804   : > { %3587 = vtanh.f32 %v2241_v59 }
 0x80d   : > { %v3586_v60 = vpop.eup %3585 }
 0x80e   : > { %v3588_v61 = vpop.eup %3587  ;;  %2247 = vst.msk [vmem:[%s473_s13 + $0x8] sm:$0xff] %vm2245_vm1, %v3586_v60 }
 0x80f   : > { %2246 = vst.msk [vmem:[%s473_s13] sm:$0xff] %vm2245_vm1, %v3588_v61 }
 0x810   : > { %3686 = shalt.err (!%p3683_p9)
}
 0x811   : > { %s3687_s12 = scalar_lea.hbm %s4458_s21, 256  ;;  %s3691_s23 = scalar_lea.hbm %s4552_s15, 512 }
 0x812   : > { %p3688_p2 = scmp.ne.s32.totalorder %s4458_s21, %s3687_s12  ;;  %p3692_p5 = scmp.lt.u32.totalorder %s4458_s21, %s4552_s15 }
 0x813   : > { %p3693_p10 = scmp.lt.u32.totalorder %s3691_s23, %s3687_s12  ;;  %p3695_p4 = scmp.lt.u32.totalorder %s3687_s12, %s4458_s21 }
 0x814   : > { %p3689_p0 = pnand %p3688_p2, %p4553_p7 }
 0x815   : > { %p3694_p12 = por %p3693_p10, %p3692_p5 }
 0x816   : > { %p3690_p3 = pneg %p3689_p0 }
 0x817   : > { %p3696_p8 = por %p3695_p4, %p3694_p12 }
 0x819   : > { %p3697_p11 = pnand %p3696_p8, %p3690_p3 }
 0x81b   : > { %3700 = shalt.err (!%p3697_p11)
}
 0x81c   : > { %s3755_s13 = smov 128   ;;  %s3756_s18 = smov 8  }
 0x81d   : > { %3507 = dma.vmem_to_hbm [thread:$0]  (%p4553_p7), %s4460_s28, 256, %s4458_s21, %s4462_s24, %s3755_s13, %s3755_s13, %s3756_s18  }
 0x81e PF: > { %s4554_s19 = sld [smem:[#allocation16_spill]]  ;;  %s4555_s29 = sld [smem:[#allocation14_spill]] }
 0x81f   : > { %s4556_s27 = sld [smem:[#allocation20_spill]] }
 0x824   : > { %p3529_p13 = scmp.ge.s32.totalorder %s4554_s19, 2  ;;  %s2277_s22 = sand.u32 1, %s4555_s29  }
 0x825   : > { %p4557_p1 = scmp.ne.s32.totalorder %s4556_s27, 0  ;;  %s2278_s30 = scalar_lea.sflag [#allocation6], %s2277_s22 }
 0x827   : > { %p3520_p6 = pnand %p3529_p13, %p4557_p1 }
 0x829   : > { %3726 = dma.done.wait (!%p3520_p6), %s2278_s30, 256  }
 0x82a   : > { %3728 = vsyncadd (!%p3520_p6), %s2278_s30, 4294967040  ;;  %s4558_s28 = sld [smem:[#allocation17_spill]]  ;;  %s4559_s12 = sld [smem:[#allocation15_spill]] }
 0x82b   : > { %s4560_s27 = sld [smem:[#allocation18_spill]]  ;;  %s4561_s25 = smov %s3735_s26 }
 0x830   : > { %p25_p9 = scmp.ge.s32.totalorder %s4558_s28, 4   ;;  %s4562_s26 = smov %s4559_s12 }
 0x832   :  { %27 = sbr.rel (!%p25_p9) target bundleno = 8 (0x8), region = 130 }
 0x839   :  { %2283 = vsyncpa [#allocation5], 1 }
 0x83a   :  { %2285 = vsyncpa [#allocation5 + $0x1], 1 }
 0x83b   :  { %2286 = vsyncpa [#allocation8], 1 }
 0x83c   :  { %2287 = vsyncpa [#allocation6], 1 }
 0x83d   :  { %2289 = vsyncpa [#allocation6 + $0x1], 1 }

</bundles_post_ra>
